<compile_context>
chip_gen: v6e
topology: v6e:2x2x1
jax: 0.10.0
libtpu: 0.0.40
codegen_flags: <defaults>
</compile_context>

<pallas_src>
import numpy as np

import jax
import jax.numpy as jnp
from jax.experimental import pallas as pl
from jax.experimental.pallas import tpu as pltpu


# ----------------------------------------------------------------------------
# host-side constants (built once per shape, outside the kernel)
# ----------------------------------------------------------------------------
def _blur_1d(L):
    """1-D factor of antialiased_cnns.BlurPool(filt_size=4, stride=1):
    4-tap [1,3,3,1]/8 with ReflectionPad (left=1, right=2), as an (L,L) matrix."""
    a = np.array([1.0, 3.0, 3.0, 1.0], np.float64) / 8.0
    B = np.zeros((L, L), np.float64)
    for i in range(L):
        for k in range(4):
            p = i - 1 + k
            if p < 0:
                p = -p
            elif p >= L:
                p = 2 * L - 2 - p
            B[i, p] += a[k]
    return B


def _mix_matrix(we_dy, W):
    """Combine the 3x3 conv's horizontal taps (zero pad) + channel mixing for
    one row-offset dy into a single (W*Cin, W*Cout) matrix."""
    _, Ci, Co = we_dy.shape
    M = np.zeros((W * Ci, W * Co), np.float64)
    for w_out in range(W):
        for dx in range(3):
            w_in = w_out + dx - 1
            if 0 <= w_in < W:
                M[w_in * Ci:(w_in + 1) * Ci, w_out * Co:(w_out + 1) * Co] = we_dy[dx]
    return M


def _row_vectors(NB, H):
    """Per-row (R,1) vectors, R = NB*H:
      rows 0..4: coefficient of x[i+d], d in (-2,-1,0,+1,+2), for the 4-tap
                 [1,3,3,1]/8 row blur with reflect pad (1,2), per image
                 (reflect boundaries folded into the coefficients; roll
                 wrap-around / cross-image rows always hit zero coefficients);
      row 5: mask for the 3x3-conv tap at h-1 (zero pad -> 0 at top row);
      row 6: mask for the tap at h+1 (0 at bottom row)."""
    assert H >= 4
    R = NB * H
    r = np.arange(R) % H
    c = np.zeros((7, R, 1), np.float64)
    c[0, :, 0] = np.where(r == H - 1, 1 / 8, 0.0)                           # d = -2
    c[1, :, 0] = np.where(r == 0, 0.0, np.where(r == H - 1, 4 / 8, 1 / 8))  # d = -1
    c[2, :, 0] = np.where(r == H - 2, 4 / 8, 3 / 8)                         # d =  0
    c[3, :, 0] = np.where(r == H - 1, 0.0, np.where(r == 0, 4 / 8, 3 / 8))  # d = +1
    c[4, :, 0] = np.where(r >= H - 2, 0.0, 1 / 8)                           # d = +2
    c[5, :, 0] = (r != 0).astype(np.float64)
    c[6, :, 0] = (r != H - 1).astype(np.float64)
    return c


def _precompute(params, W, Cl):
    """Width-wise operators as lane-packed matrices so every matmul keeps the
    (rows, W*C) slab lane-dense.

    NOTE(perf review): at these channel counts each kron(eye(W), w) weight is
    <= 64 KiB bf16; for large W*C switch to a channel-only (Cin, Cout) matmul
    on an (N*H*W, C) view (or pack only 128//C width positions per lane block)."""
    wp = np.asarray(params["wp"], np.float64)
    w1 = np.asarray(params["w1"], np.float64)
    w2 = np.asarray(params["w2"], np.float64)
    we = np.asarray(params["we"], np.float64)          # (3, 3, Cl, Co)
    BW = _blur_1d(W)
    eyeW = np.eye(W)
    return dict(
        wp_k=np.kron(eyeW, wp),                                       # plus_conv 1x1
        bp_t=np.tile(np.asarray(params["bp"])[None, :], (1, W)),
        w1_k=np.kron(eyeW, w1),                                       # pa conv1 1x1
        b1_t=np.tile(np.asarray(params["b1"])[None, :], (1, W)),
        bw2=np.kron(BW.T, w2),                    # width-blur fused into pa conv2
        b2_t=np.tile(np.asarray(params["b2"])[None, :], (1, W)),
        bw_cl=np.kron(BW.T, np.eye(Cl)),                              # width blur (Cl)
        m=np.stack([_mix_matrix(we[dy], W) for dy in range(3)]),      # 3x3 conv per dy
        be_t=np.tile(np.asarray(params["be"])[None, :], (1, W)),
    )


def _pick_nb(N, H, W, c_max, vmem_budget=24 << 20):
    """Images per grid step: target R = NB*H ~ 256 rows (fills a 256-wide MXU;
    128 already fills v5e's) within a VMEM budget, while keeping >= 2 grid
    steps so ("parallel",) semantics can shard across v7x's two TensorCores."""
    bytes_per_img = H * W * c_max * 4 * 10            # ~10 live f32 slabs / image
    nb = max(1, min(N, vmem_budget // max(bytes_per_img, 1), (256 + H - 1) // H))
    while N % nb:
        nb -= 1
    while nb > 1 and N // nb < 2:
        nb -= 1
        while N % nb:
            nb -= 1
    return nb


# ----------------------------------------------------------------------------
# fused kernel + wrapper
# ----------------------------------------------------------------------------
def asym_fusion(x_high_nchw, x_low_nchw, params, nb=None):
    xh = jnp.transpose(x_high_nchw, (0, 2, 3, 1)).astype(jnp.float32)   # NHWC
    xl = jnp.transpose(x_low_nchw, (0, 2, 3, 1)).astype(jnp.float32)    # NHWC
    N, H, W, Ch = xh.shape
    Cl = xl.shape[-1]
    C4 = Cl // 4
    Co = params["we"].shape[-1]
    # feat*ca and feat*pa in the PyTorch forward broadcast over channels.
    assert Co == Cl, "gating requires planes_out == planes_low"
    assert H >= 4, "4-tap blur coefficients assume H >= 4"

    NB = nb if nb is not None else _pick_nb(N, H, W, max(Ch, Cl))
    assert N % NB == 0
    R = NB * H
    if N // NB > 1:
        assert R % 16 == 0, "NB*H must be a multiple of 16 when tiling the batch"
    WCh, WCl, WC4, WCo = W * Ch, W * Cl, W * C4, W * Co

    c = _precompute(params, W, Cl)
    rv = jnp.asarray(_row_vectors(NB, H), jnp.float32)

    bf = lambda a: jnp.asarray(a, jnp.bfloat16)    # matmul operands -> bf16 (MXU)
    f32 = lambda a: jnp.asarray(a, jnp.float32)    # biases/coeffs stay f32 (VPU)

    # lane-dense 2-D slabs: rows = (batch, height), lanes = (width, channels)
    xh2 = bf(xh.reshape(N * H, WCh))
    xl2 = bf(xl.reshape(N * H, WCl))

    def kernel(xh_ref, xl_ref, wp_ref, bp_ref, w1_ref, b1_ref, bw2_ref, b2_ref,
               wc1_ref, bc1_ref, wc2_ref, bc2_ref, bwcl_ref, m_ref, be_ref,
               rv_ref, out_ref):
        def mm(a, b):                      # bf16 operands, f32 accumulation
            return jnp.dot(a.astype(jnp.bfloat16), b,
                           preferred_element_type=jnp.float32)

        def sigmoid(v):                    # exp + reciprocal both on the EUP
            return pl.reciprocal(1.0 + jnp.exp(-v), approx=True)

        def at_row_offset(x, d):
            # value of x at row i+d (wrapped / cross-image rows are always
            # multiplied by a zero coefficient or mask by the caller)
            s = (-d) % R
            return x if s == 0 else pltpu.roll(x, shift=s, axis=0)

        def row_blur(x):
            # 4-tap [1,3,3,1]/8 blur along H, reflect pad (1,2), per image:
            # 4 sublane rolls (XLU) + per-row coefficients (VPU), no MXU work.
            acc = rv_ref[2] * x
            for j, d in ((0, -2), (1, -1), (3, 1), (4, 2)):
                acc = acc + rv_ref[j] * at_row_offset(x, d)
            return acc

        # --- plus_conv: 1x1 conv (+folded BN) -> ReLU -> BlurPool(stride=1) --
        y = jnp.maximum(mm(xh_ref[...], wp_ref[...]) + bp_ref[...], 0.0)
        xh_b = mm(row_blur(y), bwcl_ref[...])                # width blur (MXU)

        # --- pa: 1x1 -> ReLU -> Blur -> 1x1 -> Sigmoid (width blur fused) ----
        xl_v = xl_ref[...]
        t = jnp.maximum(mm(xl_v, w1_ref[...]) + b1_ref[...], 0.0)
        pa = sigmoid(mm(row_blur(t), bw2_ref[...]) + b2_ref[...])

        # --- ca: per-image global average pool -> 1x1 MLP -> Sigmoid ---------
        # TODO(synk): the BlurPool inside `ca` acts on a 1x1 map (reflect pad 2
        # is invalid there in PyTorch); with a normalized kernel it is the
        # identity, so it is omitted.
        rows = jnp.sum(xh_b.reshape(NB, H, WCl), axis=1)     # (NB, W*Cl)
        pooled = jnp.sum(rows.reshape(NB, W, Cl), axis=1) * (1.0 / (H * W))
        h1 = jnp.maximum(mm(pooled, wc1_ref[...]) + bc1_ref[...], 0.0)
        ca = sigmoid(mm(h1, wc2_ref[...]) + bc2_ref[...])    # (NB, Cl)

        # --- feat = x_low + plus_conv(x_high); 3x3 end_conv (zero pad 1): ----
        # vertical taps via sublane rolls + boundary masks, horizontal taps +
        # channel mixing via the three lane-packed m[dy] matrices.
        feat = xl_v.astype(jnp.float32) + xh_b
        f_up = rv_ref[5] * at_row_offset(feat, -1)           # row h-1
        f_dn = rv_ref[6] * at_row_offset(feat, 1)            # row h+1
        acc = mm(f_up, m_ref[0]) + mm(feat, m_ref[1]) + mm(f_dn, m_ref[2])
        acc = jnp.maximum(acc + be_ref[...], 0.0)
        # NOTE: if the MXU is still the binding unit, this width blur (and the
        # one above) can also be moved to 4 lane rolls + reflect-edge fixups.
        acc = mm(row_blur(acc), bwcl_ref[...])               # end BlurPool

        # --- gating: feat * ca * pa -------------------------------------------
        gated = acc * pa                                     # (R, W*Cl)
        ca_row = jnp.tile(ca, (1, W))                        # (NB, W*Cl)
        out3 = gated.reshape(NB, H, WCl) * ca_row[:, None, :]
        out_ref[...] = out3.reshape(R, WCl).astype(out_ref.dtype)

    row_spec = lambda cols: pl.BlockSpec((R, cols), lambda i: (i, 0))
    # Constants are small and NB-independent now (<0.5 MiB total); at larger
    # W*C mark them pipeline_mode=pl.Buffered(1) to single-buffer their VMEM.
    cst = lambda *shape: pl.BlockSpec(shape, lambda i: (0,) * len(shape))

    out2 = pl.pallas_call(
        kernel,
        out_shape=jax.ShapeDtypeStruct((N * H, WCo), jnp.float32),
        grid=(N // NB,),
        in_specs=[
            row_spec(WCh), row_spec(WCl),
            cst(WCh, WCl), cst(1, WCl),
            cst(WCl, WC4), cst(1, WC4),
            cst(WC4, WCl), cst(1, WCl),
            cst(Cl, C4), cst(1, C4),
            cst(C4, Cl), cst(1, Cl),
            cst(WCl, WCl),
            cst(3, WCl, WCo), cst(1, WCo),
            cst(7, R, 1),
        ],
        out_specs=pl.BlockSpec((R, WCo), lambda i: (i, 0)),
        compiler_params=pltpu.CompilerParams(
            dimension_semantics=("parallel",),
            vmem_limit_bytes=32 * 1024 * 1024),
    )(xh2, xl2,
      bf(c["wp_k"]), f32(c["bp_t"]),
      bf(c["w1_k"]), f32(c["b1_t"]),
      bf(c["bw2"]), f32(c["b2_t"]),
      bf(params["wc1"]), f32(params["bc1"]).reshape(1, C4),
      bf(params["wc2"]), f32(params["bc2"]).reshape(1, Cl),
      bf(c["bw_cl"]),
      bf(c["m"]), f32(c["be_t"]),
      rv)

    return jnp.transpose(out2.reshape(N, H, W, Co), (0, 3, 1, 2))       # NCHW


# ----------------------------------------------------------------------------
# deterministic parameter init (BatchNorm folded, eval-mode running stats)
# ----------------------------------------------------------------------------
def _fold_bn(w, b, gamma, beta, mean, var, eps=1e-5):
    s = gamma / jnp.sqrt(var + eps)
    return (w * s).astype(jnp.float32), (b * s + beta - mean * s).astype(jnp.float32)


def _conv_bn_params(key, cin, cout, kernel_hw=None):
    k = jax.random.split(key, 6)
    shape = (cin, cout) if kernel_hw is None else (*kernel_hw, cin, cout)
    w = jax.random.normal(k[0], shape, jnp.float32) * 0.3
    b = jax.random.normal(k[1], (cout,), jnp.float32) * 0.1
    gamma = jax.random.uniform(k[2], (cout,), jnp.float32, minval=0.5, maxval=1.5)
    beta = jax.random.normal(k[3], (cout,), jnp.float32) * 0.1
    mean = jax.random.normal(k[4], (cout,), jnp.float32) * 0.1
    var = jax.random.uniform(k[5], (cout,), jnp.float32, minval=0.5, maxval=1.5)
    return _fold_bn(w, b, gamma, beta, mean, var)


def init_params(key, planes_high, planes_low, planes_out):
    assert planes_out == planes_low, "module broadcasting requires planes_out == planes_low"
    c4 = planes_low // 4
    ks = jax.random.split(key, 6)
    wp, bp = _conv_bn_params(ks[0], planes_high, planes_low)         # plus_conv
    w1, b1 = _conv_bn_params(ks[1], planes_low, c4)                  # pa conv1
    w2, b2 = _conv_bn_params(ks[2], c4, planes_low)                  # pa conv2
    wc1, bc1 = _conv_bn_params(ks[3], planes_low, c4)                # ca conv1
    wc2, bc2 = _conv_bn_params(ks[4], c4, planes_low)                # ca conv2
    we, be = _conv_bn_params(ks[5], planes_low, planes_out, (3, 3))  # end_conv
    return dict(wp=wp, bp=bp, w1=w1, b1=b1, w2=w2, b2=b2,
                wc1=wc1, bc1=bc1, wc2=wc2, bc2=bc2, we=we, be=be)


# ----------------------------------------------------------------------------
# pure-JAX reference (numerical sanity check)
# ----------------------------------------------------------------------------
def _ref_blur(x):
    C = x.shape[-1]
    a = jnp.asarray([1.0, 3.0, 3.0, 1.0], jnp.float32)
    k = (jnp.outer(a, a) / 64.0).astype(jnp.float32)
    xp = jnp.pad(x, ((0, 0), (1, 2), (1, 2), (0, 0)), mode="reflect")
    kw = jnp.broadcast_to(k[:, :, None, None], (4, 4, 1, C))
    return jax.lax.conv_general_dilated(
        xp, kw, (1, 1), "VALID",
        dimension_numbers=("NHWC", "HWIO", "NHWC"),
        feature_group_count=C, precision=jax.lax.Precision.HIGHEST)


def reference_forward(xh, xl, p):
    hi = jax.lax.Precision.HIGHEST
    c1 = lambda x, w, b: jnp.einsum("nhwc,cd->nhwd", x, w, precision=hi) + b
    xhp = _ref_blur(jnp.maximum(c1(xh, p["wp"], p["bp"]), 0.0))
    pa = jax.nn.sigmoid(
        c1(_ref_blur(jnp.maximum(c1(xl, p["w1"], p["b1"]), 0.0)), p["w2"], p["b2"]))
    m = jnp.mean(xhp, axis=(1, 2), keepdims=True)
    ca = jax.nn.sigmoid(
        c1(jnp.maximum(c1(m, p["wc1"], p["bc1"]), 0.0), p["wc2"], p["bc2"]))
    feat = xl + xhp
    feat = jax.lax.conv_general_dilated(
        feat, p["we"], (1, 1), ((1, 1), (1, 1)),
        dimension_numbers=("NHWC", "HWIO", "NHWC"), precision=hi) + p["be"]
    feat = _ref_blur(jnp.maximum(feat, 0.0))
    return feat * ca * pa


if __name__ == "__main__":
    planes_high, planes_low, planes_out = 16, 8, 8
    N, H, W = 2, 16, 16

    key = jax.random.PRNGKey(0)
    kp, k1, k2 = jax.random.split(key, 3)
    params = init_params(kp, planes_high, planes_low, planes_out)
    x_high = jax.random.normal(k1, (N, planes_high, H, W), jnp.float32)
    x_low = jax.random.normal(k2, (N, planes_low, H, W), jnp.float32)

    out = asym_fusion(x_high, x_low, params)
    out = jax.block_until_ready(out)
    assert out.shape == (N, planes_out, H, W)

    ref = reference_forward(jnp.transpose(x_high, (0, 2, 3, 1)),
                            jnp.transpose(x_low, (0, 2, 3, 1)), params)
    ref = jnp.transpose(ref, (0, 3, 1, 2))
    err = float(jnp.max(jnp.abs(out - ref)))
    scale = max(1.0, float(jnp.max(jnp.abs(ref))))
    # kernel matmul operands are bf16 (per perf review); reference is f32 HIGHEST
    assert err <= 3e-2 * scale, f"max abs err {err} (scale {scale})"

    print("KERNEL_OK")
</pallas_src>

<mosaic_0001>
module attributes {stable_mosaic.version = 11 : i64} {
  func.func @kernel(%arg0: i32, %arg1: memref<16x256xbf16, #tpu.memory_space<vmem>>, %arg2: memref<16x128xbf16, #tpu.memory_space<vmem>>, %arg3: memref<256x128xbf16, #tpu.memory_space<vmem>>, %arg4: memref<1x128xf32, #tpu.memory_space<vmem>>, %arg5: memref<128x32xbf16, #tpu.memory_space<vmem>>, %arg6: memref<1x32xf32, #tpu.memory_space<vmem>>, %arg7: memref<32x128xbf16, #tpu.memory_space<vmem>>, %arg8: memref<1x128xf32, #tpu.memory_space<vmem>>, %arg9: memref<8x2xbf16, #tpu.memory_space<vmem>>, %arg10: memref<1x2xf32, #tpu.memory_space<vmem>>, %arg11: memref<2x8xbf16, #tpu.memory_space<vmem>>, %arg12: memref<1x8xf32, #tpu.memory_space<vmem>>, %arg13: memref<128x128xbf16, #tpu.memory_space<vmem>>, %arg14: memref<3x128x128xbf16, #tpu.memory_space<vmem>>, %arg15: memref<1x128xf32, #tpu.memory_space<vmem>>, %arg16: memref<7x16x1xf32, #tpu.memory_space<vmem>>, %arg17: memref<16x128xf32, #tpu.memory_space<vmem>>) attributes {dimension_semantics = [#tpu.dimension_semantics<parallel>], iteration_bounds = array<i64: 2>, scalar_prefetch = 0 : i64, scratch_operands = 0 : i64, tpu.core_type = #tpu.core_type<tc>, window_params = [{transform_indices = @transform_0, window_bounds = array<i64: 16, 256>}, {transform_indices = @transform_1, window_bounds = array<i64: 16, 128>}, {pipeline_mode = #tpu.pipeline_mode<synchronous>, transform_indices = @transform_2, window_bounds = array<i64: 256, 128>}, {pipeline_mode = #tpu.pipeline_mode<synchronous>, transform_indices = @transform_3, window_bounds = array<i64: 1, 128>}, {pipeline_mode = #tpu.pipeline_mode<synchronous>, transform_indices = @transform_4, window_bounds = array<i64: 128, 32>}, {pipeline_mode = #tpu.pipeline_mode<synchronous>, transform_indices = @transform_5, window_bounds = array<i64: 1, 32>}, {pipeline_mode = #tpu.pipeline_mode<synchronous>, transform_indices = @transform_6, window_bounds = array<i64: 32, 128>}, {pipeline_mode = #tpu.pipeline_mode<synchronous>, transform_indices = @transform_7, window_bounds = array<i64: 1, 128>}, {pipeline_mode = #tpu.pipeline_mode<synchronous>, transform_indices = @transform_8, window_bounds = array<i64: 8, 2>}, {pipeline_mode = #tpu.pipeline_mode<synchronous>, transform_indices = @transform_9, window_bounds = array<i64: 1, 2>}, {pipeline_mode = #tpu.pipeline_mode<synchronous>, transform_indices = @transform_10, window_bounds = array<i64: 2, 8>}, {pipeline_mode = #tpu.pipeline_mode<synchronous>, transform_indices = @transform_11, window_bounds = array<i64: 1, 8>}, {pipeline_mode = #tpu.pipeline_mode<synchronous>, transform_indices = @transform_12, window_bounds = array<i64: 128, 128>}, {pipeline_mode = #tpu.pipeline_mode<synchronous>, transform_indices = @transform_13, window_bounds = array<i64: 3, 128, 128>}, {pipeline_mode = #tpu.pipeline_mode<synchronous>, transform_indices = @transform_14, window_bounds = array<i64: 1, 128>}, {pipeline_mode = #tpu.pipeline_mode<synchronous>, transform_indices = @transform_15, window_bounds = array<i64: 7, 16, 1>}, {transform_indices = @transform_16, window_bounds = array<i64: 16, 128>}]} {
    %c0 = arith.constant 0 : index
    %c0_0 = arith.constant 0 : index
    %0 = vector.load %arg1[%c0, %c0_0] : memref<16x256xbf16, #tpu.memory_space<vmem>>, vector<16x256xbf16>
    %c0_1 = arith.constant 0 : index
    %c0_2 = arith.constant 0 : index
    %1 = vector.load %arg3[%c0_1, %c0_2] : memref<256x128xbf16, #tpu.memory_space<vmem>>, vector<256x128xbf16>
    %cst = arith.constant dense<0.000000e+00> : vector<16x128xf32>
    %2 = tpu.matmul %0, %1, %cst {dimension_numbers = #tpu.dot_dimension_numbers<[1], [0], [0], [1], [0, 0, 1, 1], [], []>} : vector<16x256xbf16>, vector<256x128xbf16>, vector<16x128xf32> -> vector<16x128xf32>
    %c0_3 = arith.constant 0 : index
    %c0_4 = arith.constant 0 : index
    %3 = vector.load %arg4[%c0_3, %c0_4] : memref<1x128xf32, #tpu.memory_space<vmem>>, vector<1x128xf32>
    %4 = vector.broadcast %3 : vector<1x128xf32> to vector<16x128xf32>
    %5 = arith.addf %2, %4 : vector<16x128xf32>
    %cst_5 = arith.constant 0.000000e+00 : f32
    %6 = vector.broadcast %cst_5 : f32 to vector<16x128xf32>
    %7 = arith.maximumf %5, %6 : vector<16x128xf32>
    %c2 = arith.constant 2 : index
    %c0_6 = arith.constant 0 : index
    %c0_7 = arith.constant 0 : index
    %8 = vector.load %arg16[%c2, %c0_6, %c0_7] : memref<7x16x1xf32, #tpu.memory_space<vmem>>, vector<1x16x1xf32>
    %9 = vector.shape_cast %8 : vector<1x16x1xf32> to vector<16x1xf32>
    %10 = vector.broadcast %9 : vector<16x1xf32> to vector<16x128xf32>
    %11 = arith.mulf %10, %7 : vector<16x128xf32>
    %c0_8 = arith.constant 0 : index
    %c0_9 = arith.constant 0 : index
    %c0_10 = arith.constant 0 : index
    %12 = vector.load %arg16[%c0_8, %c0_9, %c0_10] : memref<7x16x1xf32, #tpu.memory_space<vmem>>, vector<1x16x1xf32>
    %13 = vector.shape_cast %12 : vector<1x16x1xf32> to vector<16x1xf32>
    %c2_i32 = arith.constant 2 : i32
    %14 = tpu.dynamic_rotate %7 by %c2_i32 dim 0 : vector<16x128xf32>, i32 -> vector<16x128xf32>
    %15 = vector.broadcast %13 : vector<16x1xf32> to vector<16x128xf32>
    %16 = arith.mulf %15, %14 : vector<16x128xf32>
    %17 = arith.addf %11, %16 : vector<16x128xf32>
    %c1 = arith.constant 1 : index
    %c0_11 = arith.constant 0 : index
    %c0_12 = arith.constant 0 : index
    %18 = vector.load %arg16[%c1, %c0_11, %c0_12] : memref<7x16x1xf32, #tpu.memory_space<vmem>>, vector<1x16x1xf32>
    %19 = vector.shape_cast %18 : vector<1x16x1xf32> to vector<16x1xf32>
    %c1_i32 = arith.constant 1 : i32
    %20 = tpu.dynamic_rotate %7 by %c1_i32 dim 0 : vector<16x128xf32>, i32 -> vector<16x128xf32>
    %21 = vector.broadcast %19 : vector<16x1xf32> to vector<16x128xf32>
    %22 = arith.mulf %21, %20 : vector<16x128xf32>
    %23 = arith.addf %17, %22 : vector<16x128xf32>
    %c3 = arith.constant 3 : index
    %c0_13 = arith.constant 0 : index
    %c0_14 = arith.constant 0 : index
    %24 = vector.load %arg16[%c3, %c0_13, %c0_14] : memref<7x16x1xf32, #tpu.memory_space<vmem>>, vector<1x16x1xf32>
    %25 = vector.shape_cast %24 : vector<1x16x1xf32> to vector<16x1xf32>
    %c15_i32 = arith.constant 15 : i32
    %26 = tpu.dynamic_rotate %7 by %c15_i32 dim 0 : vector<16x128xf32>, i32 -> vector<16x128xf32>
    %27 = vector.broadcast %25 : vector<16x1xf32> to vector<16x128xf32>
    %28 = arith.mulf %27, %26 : vector<16x128xf32>
    %29 = arith.addf %23, %28 : vector<16x128xf32>
    %c4 = arith.constant 4 : index
    %c0_15 = arith.constant 0 : index
    %c0_16 = arith.constant 0 : index
    %30 = vector.load %arg16[%c4, %c0_15, %c0_16] : memref<7x16x1xf32, #tpu.memory_space<vmem>>, vector<1x16x1xf32>
    %31 = vector.shape_cast %30 : vector<1x16x1xf32> to vector<16x1xf32>
    %c14_i32 = arith.constant 14 : i32
    %32 = tpu.dynamic_rotate %7 by %c14_i32 dim 0 : vector<16x128xf32>, i32 -> vector<16x128xf32>
    %33 = vector.broadcast %31 : vector<16x1xf32> to vector<16x128xf32>
    %34 = arith.mulf %33, %32 : vector<16x128xf32>
    %35 = arith.addf %29, %34 : vector<16x128xf32>
    %c0_17 = arith.constant 0 : index
    %c0_18 = arith.constant 0 : index
    %36 = vector.load %arg13[%c0_17, %c0_18] : memref<128x128xbf16, #tpu.memory_space<vmem>>, vector<128x128xbf16>
    %37 = arith.truncf %35 : vector<16x128xf32> to vector<16x128xbf16>
    %cst_19 = arith.constant dense<0.000000e+00> : vector<16x128xf32>
    %38 = tpu.matmul %37, %36, %cst_19 {dimension_numbers = #tpu.dot_dimension_numbers<[1], [0], [0], [1], [0, 0, 1, 1], [], []>} : vector<16x128xbf16>, vector<128x128xbf16>, vector<16x128xf32> -> vector<16x128xf32>
    %c0_20 = arith.constant 0 : index
    %c0_21 = arith.constant 0 : index
    %39 = vector.load %arg2[%c0_20, %c0_21] : memref<16x128xbf16, #tpu.memory_space<vmem>>, vector<16x128xbf16>
    %c0_22 = arith.constant 0 : index
    %c0_23 = arith.constant 0 : index
    %40 = vector.load %arg5[%c0_22, %c0_23] : memref<128x32xbf16, #tpu.memory_space<vmem>>, vector<128x32xbf16>
    %cst_24 = arith.constant dense<0.000000e+00> : vector<16x32xf32>
    %41 = tpu.matmul %39, %40, %cst_24 {dimension_numbers = #tpu.dot_dimension_numbers<[1], [0], [0], [1], [0, 0, 1, 1], [], []>} : vector<16x128xbf16>, vector<128x32xbf16>, vector<16x32xf32> -> vector<16x32xf32>
    %c0_25 = arith.constant 0 : index
    %c0_26 = arith.constant 0 : index
    %42 = vector.load %arg6[%c0_25, %c0_26] : memref<1x32xf32, #tpu.memory_space<vmem>>, vector<1x32xf32>
    %43 = vector.broadcast %42 : vector<1x32xf32> to vector<16x32xf32>
    %44 = arith.addf %41, %43 : vector<16x32xf32>
    %cst_27 = arith.constant 0.000000e+00 : f32
    %45 = vector.broadcast %cst_27 : f32 to vector<16x32xf32>
    %46 = arith.maximumf %44, %45 : vector<16x32xf32>
    %c2_28 = arith.constant 2 : index
    %c0_29 = arith.constant 0 : index
    %c0_30 = arith.constant 0 : index
    %47 = vector.load %arg16[%c2_28, %c0_29, %c0_30] : memref<7x16x1xf32, #tpu.memory_space<vmem>>, vector<1x16x1xf32>
    %48 = vector.shape_cast %47 : vector<1x16x1xf32> to vector<16x1xf32>
    %49 = vector.broadcast %48 : vector<16x1xf32> to vector<16x32xf32>
    %50 = arith.mulf %49, %46 : vector<16x32xf32>
    %c0_31 = arith.constant 0 : index
    %c0_32 = arith.constant 0 : index
    %c0_33 = arith.constant 0 : index
    %51 = vector.load %arg16[%c0_31, %c0_32, %c0_33] : memref<7x16x1xf32, #tpu.memory_space<vmem>>, vector<1x16x1xf32>
    %52 = vector.shape_cast %51 : vector<1x16x1xf32> to vector<16x1xf32>
    %c2_i32_34 = arith.constant 2 : i32
    %53 = tpu.dynamic_rotate %46 by %c2_i32_34 dim 0 : vector<16x32xf32>, i32 -> vector<16x32xf32>
    %54 = vector.broadcast %52 : vector<16x1xf32> to vector<16x32xf32>
    %55 = arith.mulf %54, %53 : vector<16x32xf32>
    %56 = arith.addf %50, %55 : vector<16x32xf32>
    %c1_35 = arith.constant 1 : index
    %c0_36 = arith.constant 0 : index
    %c0_37 = arith.constant 0 : index
    %57 = vector.load %arg16[%c1_35, %c0_36, %c0_37] : memref<7x16x1xf32, #tpu.memory_space<vmem>>, vector<1x16x1xf32>
    %58 = vector.shape_cast %57 : vector<1x16x1xf32> to vector<16x1xf32>
    %c1_i32_38 = arith.constant 1 : i32
    %59 = tpu.dynamic_rotate %46 by %c1_i32_38 dim 0 : vector<16x32xf32>, i32 -> vector<16x32xf32>
    %60 = vector.broadcast %58 : vector<16x1xf32> to vector<16x32xf32>
    %61 = arith.mulf %60, %59 : vector<16x32xf32>
    %62 = arith.addf %56, %61 : vector<16x32xf32>
    %c3_39 = arith.constant 3 : index
    %c0_40 = arith.constant 0 : index
    %c0_41 = arith.constant 0 : index
    %63 = vector.load %arg16[%c3_39, %c0_40, %c0_41] : memref<7x16x1xf32, #tpu.memory_space<vmem>>, vector<1x16x1xf32>
    %64 = vector.shape_cast %63 : vector<1x16x1xf32> to vector<16x1xf32>
    %c15_i32_42 = arith.constant 15 : i32
    %65 = tpu.dynamic_rotate %46 by %c15_i32_42 dim 0 : vector<16x32xf32>, i32 -> vector<16x32xf32>
    %66 = vector.broadcast %64 : vector<16x1xf32> to vector<16x32xf32>
    %67 = arith.mulf %66, %65 : vector<16x32xf32>
    %68 = arith.addf %62, %67 : vector<16x32xf32>
    %c4_43 = arith.constant 4 : index
    %c0_44 = arith.constant 0 : index
    %c0_45 = arith.constant 0 : index
    %69 = vector.load %arg16[%c4_43, %c0_44, %c0_45] : memref<7x16x1xf32, #tpu.memory_space<vmem>>, vector<1x16x1xf32>
    %70 = vector.shape_cast %69 : vector<1x16x1xf32> to vector<16x1xf32>
    %c14_i32_46 = arith.constant 14 : i32
    %71 = tpu.dynamic_rotate %46 by %c14_i32_46 dim 0 : vector<16x32xf32>, i32 -> vector<16x32xf32>
    %72 = vector.broadcast %70 : vector<16x1xf32> to vector<16x32xf32>
    %73 = arith.mulf %72, %71 : vector<16x32xf32>
    %74 = arith.addf %68, %73 : vector<16x32xf32>
    %c0_47 = arith.constant 0 : index
    %c0_48 = arith.constant 0 : index
    %75 = vector.load %arg7[%c0_47, %c0_48] : memref<32x128xbf16, #tpu.memory_space<vmem>>, vector<32x128xbf16>
    %76 = arith.truncf %74 : vector<16x32xf32> to vector<16x32xbf16>
    %cst_49 = arith.constant dense<0.000000e+00> : vector<16x128xf32>
    %77 = tpu.matmul %76, %75, %cst_49 {dimension_numbers = #tpu.dot_dimension_numbers<[1], [0], [0], [1], [0, 0, 1, 1], [], []>} : vector<16x32xbf16>, vector<32x128xbf16>, vector<16x128xf32> -> vector<16x128xf32>
    %c0_50 = arith.constant 0 : index
    %c0_51 = arith.constant 0 : index
    %78 = vector.load %arg8[%c0_50, %c0_51] : memref<1x128xf32, #tpu.memory_space<vmem>>, vector<1x128xf32>
    %79 = vector.broadcast %78 : vector<1x128xf32> to vector<16x128xf32>
    %80 = arith.addf %77, %79 : vector<16x128xf32>
    %cst_52 = arith.constant 0.000000e+00 : f32
    %81 = vector.broadcast %cst_52 : f32 to vector<16x128xf32>
    %82 = arith.subf %81, %80 : vector<16x128xf32>
    %83 = math.exp %82 : vector<16x128xf32>
    %cst_53 = arith.constant 1.000000e+00 : f32
    %84 = vector.broadcast %cst_53 : f32 to vector<16x128xf32>
    %85 = arith.addf %84, %83 : vector<16x128xf32>
    %86 = tpu.reciprocal %85 {approx = true} : vector<16x128xf32> -> vector<16x128xf32>
    %87 = vector.shape_cast %38 : vector<16x128xf32> to vector<1x16x128xf32>
    %cst_54 = arith.constant dense<0.000000e+00> : vector<1x128xf32>
    %88 = vector.multi_reduction <add>, %87, %cst_54 [1] : vector<1x16x128xf32> to vector<1x128xf32>
    %89 = vector.shape_cast %88 : vector<1x128xf32> to vector<1x16x8xf32>
    %cst_55 = arith.constant dense<0.000000e+00> : vector<1x8xf32>
    %90 = vector.multi_reduction <add>, %89, %cst_55 [1] : vector<1x16x8xf32> to vector<1x8xf32>
    %cst_56 = arith.constant 3.906250e-03 : f32
    %91 = vector.broadcast %cst_56 : f32 to vector<1x8xf32>
    %92 = arith.mulf %90, %91 : vector<1x8xf32>
    %c0_57 = arith.constant 0 : index
    %c0_58 = arith.constant 0 : index
    %93 = vector.load %arg9[%c0_57, %c0_58] : memref<8x2xbf16, #tpu.memory_space<vmem>>, vector<8x2xbf16>
    %94 = arith.truncf %92 : vector<1x8xf32> to vector<1x8xbf16>
    %cst_59 = arith.constant dense<0.000000e+00> : vector<1x2xf32>
    %95 = tpu.matmul %94, %93, %cst_59 {dimension_numbers = #tpu.dot_dimension_numbers<[1], [0], [0], [1], [0, 0, 1, 1], [], []>} : vector<1x8xbf16>, vector<8x2xbf16>, vector<1x2xf32> -> vector<1x2xf32>
    %c0_60 = arith.constant 0 : index
    %c0_61 = arith.constant 0 : index
    %96 = vector.load %arg10[%c0_60, %c0_61] : memref<1x2xf32, #tpu.memory_space<vmem>>, vector<1x2xf32>
    %97 = arith.addf %95, %96 : vector<1x2xf32>
    %cst_62 = arith.constant 0.000000e+00 : f32
    %98 = vector.broadcast %cst_62 : f32 to vector<1x2xf32>
    %99 = arith.maximumf %97, %98 : vector<1x2xf32>
    %c0_63 = arith.constant 0 : index
    %c0_64 = arith.constant 0 : index
    %100 = vector.load %arg11[%c0_63, %c0_64] : memref<2x8xbf16, #tpu.memory_space<vmem>>, vector<2x8xbf16>
    %101 = arith.truncf %99 : vector<1x2xf32> to vector<1x2xbf16>
    %cst_65 = arith.constant dense<0.000000e+00> : vector<1x8xf32>
    %102 = tpu.matmul %101, %100, %cst_65 {dimension_numbers = #tpu.dot_dimension_numbers<[1], [0], [0], [1], [0, 0, 1, 1], [], []>} : vector<1x2xbf16>, vector<2x8xbf16>, vector<1x8xf32> -> vector<1x8xf32>
    %c0_66 = arith.constant 0 : index
    %c0_67 = arith.constant 0 : index
    %103 = vector.load %arg12[%c0_66, %c0_67] : memref<1x8xf32, #tpu.memory_space<vmem>>, vector<1x8xf32>
    %104 = arith.addf %102, %103 : vector<1x8xf32>
    %cst_68 = arith.constant 0.000000e+00 : f32
    %105 = vector.broadcast %cst_68 : f32 to vector<1x8xf32>
    %106 = arith.subf %105, %104 : vector<1x8xf32>
    %107 = math.exp %106 : vector<1x8xf32>
    %cst_69 = arith.constant 1.000000e+00 : f32
    %108 = vector.broadcast %cst_69 : f32 to vector<1x8xf32>
    %109 = arith.addf %108, %107 : vector<1x8xf32>
    %110 = tpu.reciprocal %109 {approx = true} : vector<1x8xf32> -> vector<1x8xf32>
    %111 = arith.extf %39 : vector<16x128xbf16> to vector<16x128xf32>
    %112 = arith.addf %111, %38 : vector<16x128xf32>
    %c5 = arith.constant 5 : index
    %c0_70 = arith.constant 0 : index
    %c0_71 = arith.constant 0 : index
    %113 = vector.load %arg16[%c5, %c0_70, %c0_71] : memref<7x16x1xf32, #tpu.memory_space<vmem>>, vector<1x16x1xf32>
    %114 = vector.shape_cast %113 : vector<1x16x1xf32> to vector<16x1xf32>
    %c1_i32_72 = arith.constant 1 : i32
    %115 = tpu.dynamic_rotate %112 by %c1_i32_72 dim 0 : vector<16x128xf32>, i32 -> vector<16x128xf32>
    %116 = vector.broadcast %114 : vector<16x1xf32> to vector<16x128xf32>
    %117 = arith.mulf %116, %115 : vector<16x128xf32>
    %c6 = arith.constant 6 : index
    %c0_73 = arith.constant 0 : index
    %c0_74 = arith.constant 0 : index
    %118 = vector.load %arg16[%c6, %c0_73, %c0_74] : memref<7x16x1xf32, #tpu.memory_space<vmem>>, vector<1x16x1xf32>
    %119 = vector.shape_cast %118 : vector<1x16x1xf32> to vector<16x1xf32>
    %c15_i32_75 = arith.constant 15 : i32
    %120 = tpu.dynamic_rotate %112 by %c15_i32_75 dim 0 : vector<16x128xf32>, i32 -> vector<16x128xf32>
    %121 = vector.broadcast %119 : vector<16x1xf32> to vector<16x128xf32>
    %122 = arith.mulf %121, %120 : vector<16x128xf32>
    %c0_76 = arith.constant 0 : index
    %c0_77 = arith.constant 0 : index
    %c0_78 = arith.constant 0 : index
    %123 = vector.load %arg14[%c0_76, %c0_77, %c0_78] : memref<3x128x128xbf16, #tpu.memory_space<vmem>>, vector<1x128x128xbf16>
    %124 = vector.shape_cast %123 : vector<1x128x128xbf16> to vector<128x128xbf16>
    %125 = arith.truncf %117 : vector<16x128xf32> to vector<16x128xbf16>
    %cst_79 = arith.constant dense<0.000000e+00> : vector<16x128xf32>
    %126 = tpu.matmul %125, %124, %cst_79 {dimension_numbers = #tpu.dot_dimension_numbers<[1], [0], [0], [1], [0, 0, 1, 1], [], []>} : vector<16x128xbf16>, vector<128x128xbf16>, vector<16x128xf32> -> vector<16x128xf32>
    %c1_80 = arith.constant 1 : index
    %c0_81 = arith.constant 0 : index
    %c0_82 = arith.constant 0 : index
    %127 = vector.load %arg14[%c1_80, %c0_81, %c0_82] : memref<3x128x128xbf16, #tpu.memory_space<vmem>>, vector<1x128x128xbf16>
    %128 = vector.shape_cast %127 : vector<1x128x128xbf16> to vector<128x128xbf16>
    %129 = arith.truncf %112 : vector<16x128xf32> to vector<16x128xbf16>
    %cst_83 = arith.constant dense<0.000000e+00> : vector<16x128xf32>
    %130 = tpu.matmul %129, %128, %cst_83 {dimension_numbers = #tpu.dot_dimension_numbers<[1], [0], [0], [1], [0, 0, 1, 1], [], []>} : vector<16x128xbf16>, vector<128x128xbf16>, vector<16x128xf32> -> vector<16x128xf32>
    %131 = arith.addf %126, %130 : vector<16x128xf32>
    %c2_84 = arith.constant 2 : index
    %c0_85 = arith.constant 0 : index
    %c0_86 = arith.constant 0 : index
    %132 = vector.load %arg14[%c2_84, %c0_85, %c0_86] : memref<3x128x128xbf16, #tpu.memory_space<vmem>>, vector<1x128x128xbf16>
    %133 = vector.shape_cast %132 : vector<1x128x128xbf16> to vector<128x128xbf16>
    %134 = arith.truncf %122 : vector<16x128xf32> to vector<16x128xbf16>
    %cst_87 = arith.constant dense<0.000000e+00> : vector<16x128xf32>
    %135 = tpu.matmul %134, %133, %cst_87 {dimension_numbers = #tpu.dot_dimension_numbers<[1], [0], [0], [1], [0, 0, 1, 1], [], []>} : vector<16x128xbf16>, vector<128x128xbf16>, vector<16x128xf32> -> vector<16x128xf32>
    %136 = arith.addf %131, %135 : vector<16x128xf32>
    %c0_88 = arith.constant 0 : index
    %c0_89 = arith.constant 0 : index
    %137 = vector.load %arg15[%c0_88, %c0_89] : memref<1x128xf32, #tpu.memory_space<vmem>>, vector<1x128xf32>
    %138 = vector.broadcast %137 : vector<1x128xf32> to vector<16x128xf32>
    %139 = arith.addf %136, %138 : vector<16x128xf32>
    %cst_90 = arith.constant 0.000000e+00 : f32
    %140 = vector.broadcast %cst_90 : f32 to vector<16x128xf32>
    %141 = arith.maximumf %139, %140 : vector<16x128xf32>
    %c2_91 = arith.constant 2 : index
    %c0_92 = arith.constant 0 : index
    %c0_93 = arith.constant 0 : index
    %142 = vector.load %arg16[%c2_91, %c0_92, %c0_93] : memref<7x16x1xf32, #tpu.memory_space<vmem>>, vector<1x16x1xf32>
    %143 = vector.shape_cast %142 : vector<1x16x1xf32> to vector<16x1xf32>
    %144 = vector.broadcast %143 : vector<16x1xf32> to vector<16x128xf32>
    %145 = arith.mulf %144, %141 : vector<16x128xf32>
    %c0_94 = arith.constant 0 : index
    %c0_95 = arith.constant 0 : index
    %c0_96 = arith.constant 0 : index
    %146 = vector.load %arg16[%c0_94, %c0_95, %c0_96] : memref<7x16x1xf32, #tpu.memory_space<vmem>>, vector<1x16x1xf32>
    %147 = vector.shape_cast %146 : vector<1x16x1xf32> to vector<16x1xf32>
    %c2_i32_97 = arith.constant 2 : i32
    %148 = tpu.dynamic_rotate %141 by %c2_i32_97 dim 0 : vector<16x128xf32>, i32 -> vector<16x128xf32>
    %149 = vector.broadcast %147 : vector<16x1xf32> to vector<16x128xf32>
    %150 = arith.mulf %149, %148 : vector<16x128xf32>
    %151 = arith.addf %145, %150 : vector<16x128xf32>
    %c1_98 = arith.constant 1 : index
    %c0_99 = arith.constant 0 : index
    %c0_100 = arith.constant 0 : index
    %152 = vector.load %arg16[%c1_98, %c0_99, %c0_100] : memref<7x16x1xf32, #tpu.memory_space<vmem>>, vector<1x16x1xf32>
    %153 = vector.shape_cast %152 : vector<1x16x1xf32> to vector<16x1xf32>
    %c1_i32_101 = arith.constant 1 : i32
    %154 = tpu.dynamic_rotate %141 by %c1_i32_101 dim 0 : vector<16x128xf32>, i32 -> vector<16x128xf32>
    %155 = vector.broadcast %153 : vector<16x1xf32> to vector<16x128xf32>
    %156 = arith.mulf %155, %154 : vector<16x128xf32>
    %157 = arith.addf %151, %156 : vector<16x128xf32>
    %c3_102 = arith.constant 3 : index
    %c0_103 = arith.constant 0 : index
    %c0_104 = arith.constant 0 : index
    %158 = vector.load %arg16[%c3_102, %c0_103, %c0_104] : memref<7x16x1xf32, #tpu.memory_space<vmem>>, vector<1x16x1xf32>
    %159 = vector.shape_cast %158 : vector<1x16x1xf32> to vector<16x1xf32>
    %c15_i32_105 = arith.constant 15 : i32
    %160 = tpu.dynamic_rotate %141 by %c15_i32_105 dim 0 : vector<16x128xf32>, i32 -> vector<16x128xf32>
    %161 = vector.broadcast %159 : vector<16x1xf32> to vector<16x128xf32>
    %162 = arith.mulf %161, %160 : vector<16x128xf32>
    %163 = arith.addf %157, %162 : vector<16x128xf32>
    %c4_106 = arith.constant 4 : index
    %c0_107 = arith.constant 0 : index
    %c0_108 = arith.constant 0 : index
    %164 = vector.load %arg16[%c4_106, %c0_107, %c0_108] : memref<7x16x1xf32, #tpu.memory_space<vmem>>, vector<1x16x1xf32>
    %165 = vector.shape_cast %164 : vector<1x16x1xf32> to vector<16x1xf32>
    %c14_i32_109 = arith.constant 14 : i32
    %166 = tpu.dynamic_rotate %141 by %c14_i32_109 dim 0 : vector<16x128xf32>, i32 -> vector<16x128xf32>
    %167 = vector.broadcast %165 : vector<16x1xf32> to vector<16x128xf32>
    %168 = arith.mulf %167, %166 : vector<16x128xf32>
    %169 = arith.addf %163, %168 : vector<16x128xf32>
    %c0_110 = arith.constant 0 : index
    %c0_111 = arith.constant 0 : index
    %170 = vector.load %arg13[%c0_110, %c0_111] : memref<128x128xbf16, #tpu.memory_space<vmem>>, vector<128x128xbf16>
    %171 = arith.truncf %169 : vector<16x128xf32> to vector<16x128xbf16>
    %cst_112 = arith.constant dense<0.000000e+00> : vector<16x128xf32>
    %172 = tpu.matmul %171, %170, %cst_112 {dimension_numbers = #tpu.dot_dimension_numbers<[1], [0], [0], [1], [0, 0, 1, 1], [], []>} : vector<16x128xbf16>, vector<128x128xbf16>, vector<16x128xf32> -> vector<16x128xf32>
    %173 = arith.mulf %172, %86 : vector<16x128xf32>
    %174 = tpu.concatenate %110, %110, %110, %110, %110, %110, %110, %110, %110, %110, %110, %110, %110, %110, %110, %110 in 1 : vector<1x8xf32>, vector<1x8xf32>, vector<1x8xf32>, vector<1x8xf32>, vector<1x8xf32>, vector<1x8xf32>, vector<1x8xf32>, vector<1x8xf32>, vector<1x8xf32>, vector<1x8xf32>, vector<1x8xf32>, vector<1x8xf32>, vector<1x8xf32>, vector<1x8xf32>, vector<1x8xf32>, vector<1x8xf32> -> vector<1x128xf32>
    %175 = vector.shape_cast %173 : vector<16x128xf32> to vector<1x16x128xf32>
    %176 = vector.shape_cast %174 : vector<1x128xf32> to vector<1x1x128xf32>
    %177 = vector.broadcast %176 : vector<1x1x128xf32> to vector<1x16x128xf32>
    %178 = arith.mulf %175, %177 : vector<1x16x128xf32>
    %179 = vector.shape_cast %178 : vector<1x16x128xf32> to vector<16x128xf32>
    %c0_113 = arith.constant 0 : index
    %c0_114 = arith.constant 0 : index
    %180 = vector.load %arg17[%c0_113, %c0_114] : memref<16x128xf32, #tpu.memory_space<vmem>>, vector<16x128xf32>
    tpu.vector_store %arg17[%c0_113, %c0_114], %179 {strides = array<i32>} : memref<16x128xf32, #tpu.memory_space<vmem>>, vector<16x128xf32>,
    return
  }
  func.func @transform_0(%arg0: i32) -> (i32, i32) {
    %c0_i32 = arith.constant 0 : i32
    %c0_i32_0 = arith.constant 0 : i32
    return %arg0, %c0_i32 : i32, i32
  }
  func.func @transform_1(%arg0: i32) -> (i32, i32) {
    %c0_i32 = arith.constant 0 : i32
    %c0_i32_0 = arith.constant 0 : i32
    return %arg0, %c0_i32 : i32, i32
  }
  func.func @transform_2(%arg0: i32) -> (i32, i32) {
    %c0_i32 = arith.constant 0 : i32
    %c0_i32_0 = arith.constant 0 : i32
    %c0_i32_1 = arith.constant 0 : i32
    return %c0_i32, %c0_i32_0 : i32, i32
  }
  func.func @transform_3(%arg0: i32) -> (i32, i32) {
    %c0_i32 = arith.constant 0 : i32
    %c0_i32_0 = arith.constant 0 : i32
    %c0_i32_1 = arith.constant 0 : i32
    return %c0_i32, %c0_i32_0 : i32, i32
  }
  func.func @transform_4(%arg0: i32) -> (i32, i32) {
    %c0_i32 = arith.constant 0 : i32
    %c0_i32_0 = arith.constant 0 : i32
    %c0_i32_1 = arith.constant 0 : i32
    return %c0_i32, %c0_i32_0 : i32, i32
  }
  func.func @transform_5(%arg0: i32) -> (i32, i32) {
    %c0_i32 = arith.constant 0 : i32
    %c0_i32_0 = arith.constant 0 : i32
    %c0_i32_1 = arith.constant 0 : i32
    return %c0_i32, %c0_i32_0 : i32, i32
  }
  func.func @transform_6(%arg0: i32) -> (i32, i32) {
    %c0_i32 = arith.constant 0 : i32
    %c0_i32_0 = arith.constant 0 : i32
    %c0_i32_1 = arith.constant 0 : i32
    return %c0_i32, %c0_i32_0 : i32, i32
  }
  func.func @transform_7(%arg0: i32) -> (i32, i32) {
    %c0_i32 = arith.constant 0 : i32
    %c0_i32_0 = arith.constant 0 : i32
    %c0_i32_1 = arith.constant 0 : i32
    return %c0_i32, %c0_i32_0 : i32, i32
  }
  func.func @transform_8(%arg0: i32) -> (i32, i32) {
    %c0_i32 = arith.constant 0 : i32
    %c0_i32_0 = arith.constant 0 : i32
    %c0_i32_1 = arith.constant 0 : i32
    return %c0_i32, %c0_i32_0 : i32, i32
  }
  func.func @transform_9(%arg0: i32) -> (i32, i32) {
    %c0_i32 = arith.constant 0 : i32
    %c0_i32_0 = arith.constant 0 : i32
    %c0_i32_1 = arith.constant 0 : i32
    return %c0_i32, %c0_i32_0 : i32, i32
  }
  func.func @transform_10(%arg0: i32) -> (i32, i32) {
    %c0_i32 = arith.constant 0 : i32
    %c0_i32_0 = arith.constant 0 : i32
    %c0_i32_1 = arith.constant 0 : i32
    return %c0_i32, %c0_i32_0 : i32, i32
  }
  func.func @transform_11(%arg0: i32) -> (i32, i32) {
    %c0_i32 = arith.constant 0 : i32
    %c0_i32_0 = arith.constant 0 : i32
    %c0_i32_1 = arith.constant 0 : i32
    return %c0_i32, %c0_i32_0 : i32, i32
  }
  func.func @transform_12(%arg0: i32) -> (i32, i32) {
    %c0_i32 = arith.constant 0 : i32
    %c0_i32_0 = arith.constant 0 : i32
    %c0_i32_1 = arith.constant 0 : i32
    return %c0_i32, %c0_i32_0 : i32, i32
  }
  func.func @transform_13(%arg0: i32) -> (i32, i32, i32) {
    %c0_i32 = arith.constant 0 : i32
    %c0_i32_0 = arith.constant 0 : i32
    %c0_i32_1 = arith.constant 0 : i32
    %c0_i32_2 = arith.constant 0 : i32
    return %c0_i32, %c0_i32_0, %c0_i32_1 : i32, i32, i32
  }
  func.func @transform_14(%arg0: i32) -> (i32, i32) {
    %c0_i32 = arith.constant 0 : i32
    %c0_i32_0 = arith.constant 0 : i32
    %c0_i32_1 = arith.constant 0 : i32
    return %c0_i32, %c0_i32_0 : i32, i32
  }
  func.func @transform_15(%arg0: i32) -> (i32, i32, i32) {
    %c0_i32 = arith.constant 0 : i32
    %c0_i32_0 = arith.constant 0 : i32
    %c0_i32_1 = arith.constant 0 : i32
    %c0_i32_2 = arith.constant 0 : i32
    return %c0_i32, %c0_i32_0, %c0_i32_1 : i32, i32, i32
  }
  func.func @transform_16(%arg0: i32) -> (i32, i32) {
    %c0_i32 = arith.constant 0 : i32
    %c0_i32_0 = arith.constant 0 : i32
    return %arg0, %c0_i32 : i32, i32
  }
}

</mosaic_0001>

<bundles_post_ra>
// kernel: tpu_custom_call.1
= control target key start
LH: loop header
LB: loop body
LE: loop exit
PB: predicated region body
PF: predicated region fallthrough
CT: control target
= control target key end

     0   :  { %s4224_s0 = inlined_call_operand.vmem [shape: bf16[32,256], index: 0, kind: input, shape index: {}]   ;;  %s4225_s1 = inlined_call_operand.hbm [shape: bf16[32,128], index: 1, kind: input, shape index: {}]   ;;  %s4226_s2 = inlined_call_operand.hbm [shape: bf16[256,128], index: 2, kind: input, shape index: {}]   ;;  %s4227_s3 = inlined_call_operand.hbm [shape: f32[1,128], index: 3, kind: input, shape index: {}]   ;;  %s4228_s4 = inlined_call_operand.vmem [shape: bf16[128,32], index: 4, kind: input, shape index: {}]   ;;  %s4229_s5 = inlined_call_operand.hbm [shape: f32[1,32], index: 5, kind: input, shape index: {}]   ;;  %s4230_s6 = inlined_call_operand.hbm [shape: bf16[32,128], index: 6, kind: input, shape index: {}]   ;;  %s4231_s7 = inlined_call_operand.hbm [shape: f32[1,128], index: 7, kind: input, shape index: {}]   ;;  %s4232_s8 = inlined_call_operand.vmem [shape: bf16[8,2], index: 8, kind: input, shape index: {}]   ;;  %s4233_s9 = inlined_call_operand.hbm [shape: f32[1,2], index: 9, kind: input, shape index: {}]   ;;  %s4234_s10 = inlined_call_operand.hbm [shape: bf16[2,8], index: 10, kind: input, shape index: {}]   ;;  %s4235_s11 = inlined_call_operand.hbm [shape: f32[1,8], index: 11, kind: input, shape index: {}]   ;;  %s4236_s12 = inlined_call_operand.hbm [shape: bf16[128,128], index: 12, kind: input, shape index: {}]   ;;  %s4237_s13 = inlined_call_operand.vmem [shape: bf16[3,128,128], index: 13, kind: input, shape index: {}]   ;;  %s4238_s14 = inlined_call_operand.hbm [shape: f32[1,128], index: 14, kind: input, shape index: {}]   ;;  %s4239_s15 = inlined_call_operand.vmem [shape: f32[7,16,1], index: 15, kind: input, shape index: {}]   ;;  %s4240_s16 = inlined_call_operand.hbm [shape: f32[32,128], index: 16, kind: output, shape index: {}]  }
   0x1   :  { %4262 = sst [smem:[#allocation28_spill]] %s4224_s0 }
   0x2   :  { %4263 = sst [smem:[#allocation29_spill]] %s4226_s2 }
   0x3   :  { %4264 = sst [smem:[#allocation30_spill]] %s4227_s3 }
   0x4   :  { %4265 = sst [smem:[#allocation31_spill]] %s4228_s4 }
   0x5   :  { %4266 = sst [smem:[#allocation32_spill]] %s4229_s5 }
   0x6   :  { %4267 = sst [smem:[#allocation33_spill]] %s4230_s6 }
   0x7   :  { %4268 = sst [smem:[#allocation34_spill]] %s4231_s7 }
   0x8   :  { %4269 = sst [smem:[#allocation35_spill]] %s4232_s8 }
   0x9   :  { %4270 = sst [smem:[#allocation36_spill]] %s4233_s9 }
   0xa   :  { %4271 = sst [smem:[#allocation37_spill]] %s4237_s13 }
   0xb   :  { %4272 = sst [smem:[#allocation38_spill]] %s4240_s16 }
   0xc   :  { %21 = vsyncpa [#allocation3], 0 }
   0xd   :  { %23 = vsyncpa [#allocation3 + $0x1], 0 }
   0xe   :  { %24 = vsyncpa [#allocation6], 0 }
   0xf   :  { %25 = vsyncpa [#allocation9], 0 }
  0x10   :  { %26 = vsyncpa [#allocation12], 0 }
  0x11   :  { %27 = vsyncpa [#allocation15], 0 }
  0x12   :  { %28 = vsyncpa [#allocation18], 0 }
  0x13   :  { %29 = vsyncpa [#allocation4], 0 }
  0x14   :  { %31 = vsyncpa [#allocation4 + $0x1], 0  ;;  %s3448_s21 = smov 0   ;;  %s3450_s22 = smov 0  }
  0x15   :  { %s3452_s23 = smov 0   ;;  %s3454_s24 = smov 0  }
  0x16 LB: > { %s3328_s25 = smov [#allocation5]   ;;  %s3469_s27 = sadd.s32 4294967295, %s3326_s24   ;;  %s3326_s24 = sphi %s3454_s24, %s4324_s24   ;;  %s3322_s23 = sphi %s3452_s23, %s4323_s23   ;;  %s3318_s22 = sphi %s3450_s22, %s4322_s22   ;;  %s3314_s21 = sphi %s3448_s21, %s4321_s21  }
  0x17   : > { %s426_s26 = sshll.u32 %s3328_s25, 4  ;;  %p2333_p0 = scmp.ge.s32.totalorder %s3326_s24, 1  ;;  %s427_s26 = int_to_ptr.vmem [resolvable:$true] %s426_s26 }
  0x18   : > { %p4246_p1 = scmp.eq.s32.totalorder %s3469_s27, 0  ;;  %p414_p2 = scmp.lt.s32.totalorder %s3326_s24, 3 }
  0x19   : > { %s3329_s29 = smov [#allocation8]   ;;  %s3330_s17 = smov [#allocation11]  }
  0x1a   : > { %p3474_p3 = pnand %p2333_p0, %p414_p2  ;;  %s454_s30 = sshll.u32 %s3329_s29, 4  ;;  %s455_s30 = int_to_ptr.vmem [resolvable:$true] %s454_s30 }
  0x1b   : > { %s478_s18 = sshll.u32 %s3330_s17, 4  ;;  %s2965_s20 = scalar_lea.vmem %s427_s26, 2048  ;;  %s3487_s18 = int_to_ptr.vmem [resolvable:$true] %s478_s18 }
  0x1c   : > { %s4273_s28 = scalar_select %p3474_p3, 1, 0 }
  0x1d   : > { %p2751_p5 = pneg %p3474_p3  ;;  %p2966_p8 = scmp.ne.s32.totalorder %s427_s26, %s2965_s20 }
  0x1e   : > { %p2973_p11 = scmp.lt.s32.totalorder %s427_s26, %s427_s26  ;;  %p2974_p12 = scmp.lt.s32.totalorder %s2965_s20, %s2965_s20 }
  0x1f   : > { %p3483_p6 = pnand %p2751_p5, %p4246_p1 }
  0x20   : > { %p2975_p13 = por %p2974_p12, %p2973_p11 }
  0x21   : > { %p3491_p7 = pneg %p3483_p6 }
  0x23   : > { %p2968_p9 = pnand %p2966_p8, %p3491_p7 }
  0x25   : > { %p2969_p10 = pneg %p2968_p9 }
  0x27   : > { %p2976_p0 = pnand %p2975_p13, %p2969_p10 }
  0x29   : > { %2979 = shalt.err (!%p2976_p0)
}
  0x2a   : > { %s4244_s25 = smov 64   ;;  %s4248_s29 = smov 4  }
  0x2b   : > { %s4276_s2 = sld [smem:[#allocation29_spill]]  ;;  %s2991_s8 = scalar_lea.vmem %s455_s30, 16 }
  0x2c   : > { %p2992_p2 = scmp.ne.s32.totalorder %s455_s30, %s2991_s8  ;;  %s2998_s20 = scalar_lea.vmem %s455_s30, 32 }
  0x2d   : > { %p2999_p9 = scmp.lt.s32.totalorder %s455_s30, %s455_s30  ;;  %p3000_p10 = scmp.lt.s32.totalorder %s2998_s20, %s2991_s8 }
  0x2e   : > { %p2994_p5 = pnand %p2992_p2, %p3491_p7 }
  0x2f   : > { %p3001_p11 = por %p3000_p10, %p2999_p9 }
  0x30   : > { %p2995_p8 = pneg %p2994_p5 }
  0x31   : > { %2754 = dma.hbm_to_vmem [thread:$0]  (!%p3483_p6), %s4276_s2, 2048, %s427_s26, [#allocation6], %s4244_s25, %s4244_s25, %s4248_s29  }
  0x32   : > { %p3002_p12 = pnand %p3001_p11, %p2995_p8 }
  0x34   : > { %3005 = shalt.err (!%p3002_p12)
}
  0x35   : > { %s4277_s5 = sld [smem:[#allocation32_spill]]  ;;  %s3017_s16 = scalar_lea.vmem %s3487_s18, 16 }
  0x36   : > { %p3018_p13 = scmp.ne.s32.totalorder %s3487_s18, %s3017_s16  ;;  %s3024_s8 = scalar_lea.vmem %s3487_s18, 32 }
  0x37   : > { %p3025_p5 = scmp.lt.s32.totalorder %s3487_s18, %s3487_s18  ;;  %p3026_p8 = scmp.lt.s32.totalorder %s3024_s8, %s3017_s16 }
  0x38   : > { %p3020_p0 = pnand %p3018_p13, %p3491_p7 }
  0x39   : > { %p3027_p9 = por %p3026_p8, %p3025_p5 }
  0x3a   : > { %p3021_p2 = pneg %p3020_p0 }
  0x3b   : > { %2760 = dma.hbm_to_vmem [thread:$0]  (!%p3483_p6), %s4277_s5, 16, %s455_s30, [#allocation9]  }
  0x3c   : > { %p3028_p10 = pnand %p3027_p9, %p3021_p2 }
  0x3e   : > { %3031 = shalt.err (!%p3028_p10)
}
  0x3f   : > { %s4278_s7 = sld [smem:[#allocation34_spill]]  ;;  %s3333_s26 = smov [#allocation14]  }
  0x40   : > { %s503_s30 = sshll.u32 %s3333_s26, 4  ;;  %s3334_s17 = smov [#allocation17]   ;;  %s504_s30 = int_to_ptr.vmem [resolvable:$true] %s503_s30 }
  0x41   : > { %s524_s20 = sshll.u32 %s3334_s17, 4  ;;  %s3043_s25 = scalar_lea.vmem %s504_s30, 16  ;;  %s525_s20 = int_to_ptr.vmem [resolvable:$true] %s524_s20 }
  0x42   : > { %p3044_p11 = scmp.ne.s32.totalorder %s504_s30, %s3043_s25  ;;  %s3050_s16 = scalar_lea.vmem %s504_s30, 32 }
  0x43   : > { %p3051_p0 = scmp.lt.s32.totalorder %s504_s30, %s504_s30  ;;  %p3052_p2 = scmp.lt.s32.totalorder %s3050_s16, %s3043_s25 }
  0x44   : > { %p3046_p12 = pnand %p3044_p11, %p3491_p7 }
  0x45   : > { %2766 = dma.hbm_to_vmem [thread:$0]  (!%p3483_p6), %s4278_s7, 16, %s3487_s18, [#allocation12]  }
  0x46   : > { %p3047_p13 = pneg %p3046_p12  ;;  %p3053_p5 = por %p3052_p2, %p3051_p0 }
  0x48   : > { %p3054_p8 = pnand %p3053_p5, %p3047_p13 }
  0x4a   : > { %3057 = shalt.err (!%p3054_p8)
}
  0x4b   : > { %2772 = dma.hbm_to_vmem [thread:$0]  (!%p3483_p6), %s4234_s10, 16, %s504_s30, [#allocation15]  }
  0x4c   : > { %s3069_s4 = scalar_lea.vmem %s525_s20, 1024  ;;  %p3077_p12 = scmp.lt.s32.totalorder %s525_s20, %s525_s20 }
  0x4d   : > { %p3070_p9 = scmp.ne.s32.totalorder %s525_s20, %s3069_s4  ;;  %p3078_p4 = scmp.lt.s32.totalorder %s3069_s4, %s3069_s4 }
  0x4f   : > { %p3072_p10 = pnand %p3070_p9, %p3491_p7  ;;  %p3079_p1 = por %p3078_p4, %p3077_p12 }
  0x51   : > { %p3073_p11 = pneg %p3072_p10 }
  0x53   : > { %p3080_p3 = pnand %p3079_p1, %p3073_p11 }
  0x55   : > { %3083 = shalt.err (!%p3080_p3)
}
  0x56   : > { %s4279_s25 = smov 64   ;;  %s3335_s30 = smov [#allocation7]  }
  0x57   : > { %2778 = dma.hbm_to_vmem [thread:$0]  (!%p3483_p6), %s4236_s12, 1024, %s525_s20, [#allocation18], %s4279_s25, %s4279_s25, %s4248_s29  }
  0x58   : > { %s440_s17 = sshll.u32 %s3335_s30, 4  ;;  %s3336_s16 = smov [#allocation10]   ;;  %s441_s17 = int_to_ptr.vmem [resolvable:$true] %s440_s17 }
  0x59   : > { %s464_s8 = sshll.u32 %s3336_s16, 4  ;;  %s3095_s18 = scalar_lea.vmem %s441_s17, 16  ;;  %s465_s8 = int_to_ptr.vmem [resolvable:$true] %s464_s8 }
  0x5a   : > { %p3096_p13 = scmp.ne.s32.totalorder %s441_s17, %s3095_s18  ;;  %s3102_s4 = scalar_lea.vmem %s441_s17, 32 }
  0x5b   : > { %p3103_p4 = scmp.lt.s32.totalorder %s441_s17, %s441_s17  ;;  %p3104_p0 = scmp.lt.s32.totalorder %s3102_s4, %s3095_s18 }
  0x5c   : > { %p3098_p1 = pnand %p3096_p13, %p3491_p7 }
  0x5d   : > { %p3105_p2 = por %p3104_p0, %p3103_p4 }
  0x5e   : > { %p3099_p3 = pneg %p3098_p1 }
  0x60   : > { %p3106_p5 = pnand %p3105_p2, %p3099_p3 }
  0x62   : > { %3109 = shalt.err (!%p3106_p5)
}
  0x63   : > { %s4280_s3 = sld [smem:[#allocation30_spill]]  ;;  %s3121_s26 = scalar_lea.vmem %s465_s8, 256 }
  0x64   : > { %p3122_p8 = scmp.ne.s32.totalorder %s465_s8, %s3121_s26  ;;  %p3129_p11 = scmp.lt.s32.totalorder %s465_s8, %s465_s8 }
  0x65   : > { %p3130_p12 = scmp.lt.s32.totalorder %s3121_s26, %s3121_s26 }
  0x66   : > { %p3124_p9 = pnand %p3122_p8, %p3491_p7 }
  0x67   : > { %p3131_p13 = por %p3130_p12, %p3129_p11 }
  0x68   : > { %p3125_p10 = pneg %p3124_p9 }
  0x69   : > { %2757 = dma.hbm_to_vmem [thread:$0]  (!%p3483_p6), %s4280_s3, 16, %s441_s17, [#allocation6]  }
  0x6a   : > { %p3132_p1 = pnand %p3131_p13, %p3125_p10 }
  0x6c   : > { %3135 = shalt.err (!%p3132_p1)
}
  0x6d   : > { %s4281_s6 = sld [smem:[#allocation33_spill]]  ;;  %s3337_s17 = smov [#allocation13]  }
  0x6e   : > { %s492_s18 = sshll.u32 %s3337_s17, 4  ;;  %s3338_s4 = smov [#allocation16]   ;;  %s493_s18 = int_to_ptr.vmem [resolvable:$true] %s492_s18 }
  0x6f   : > { %s514_s13 = sshll.u32 %s3338_s4, 4  ;;  %s3147_s20 = scalar_lea.vmem %s493_s18, 16  ;;  %s515_s13 = int_to_ptr.vmem [resolvable:$true] %s514_s13 }
  0x70   : > { %p3148_p3 = scmp.ne.s32.totalorder %s493_s18, %s3147_s20  ;;  %s3154_s26 = scalar_lea.vmem %s493_s18, 32 }
  0x71   : > { %p3155_p2 = scmp.lt.s32.totalorder %s493_s18, %s493_s18  ;;  %p3156_p5 = scmp.lt.s32.totalorder %s3154_s26, %s3147_s20 }
  0x72   : > { %p3150_p4 = pnand %p3148_p3, %p3491_p7 }
  0x73   : > { %2763 = dma.hbm_to_vmem [thread:$0]  (!%p3483_p6), %s4281_s6, 256, %s465_s8, [#allocation9], %s4279_s25, %s4279_s25, %s4248_s29  }
  0x74   : > { %p3151_p0 = pneg %p3150_p4  ;;  %p3157_p8 = por %p3156_p5, %p3155_p2 }
  0x76   : > { %p3158_p9 = pnand %p3157_p8, %p3151_p0 }
  0x78   : > { %3161 = shalt.err (!%p3158_p9)
}
  0x79   : > { %s4282_s9 = sld [smem:[#allocation36_spill]]  ;;  %s3173_s16 = scalar_lea.vmem %s515_s13, 16 }
  0x7a   : > { %p3174_p10 = scmp.ne.s32.totalorder %s515_s13, %s3173_s16  ;;  %s3180_s17 = scalar_lea.vmem %s515_s13, 32 }
  0x7b   : > { %p3181_p13 = scmp.lt.s32.totalorder %s515_s13, %s515_s13  ;;  %p3182_p1 = scmp.lt.s32.totalorder %s3180_s17, %s3173_s16 }
  0x7c   : > { %p3176_p11 = pnand %p3174_p10, %p3491_p7 }
  0x7d   : > { %p3183_p3 = por %p3182_p1, %p3181_p13 }
  0x7e   : > { %p3177_p12 = pneg %p3176_p11 }
  0x7f   : > { %2769 = dma.hbm_to_vmem [thread:$0]  (!%p3483_p6), %s4282_s9, 16, %s493_s18, [#allocation12]  }
  0x80   : > { %p3184_p4 = pnand %p3183_p3, %p3177_p12 }
  0x82   : > { %3187 = shalt.err (!%p3184_p4)
}
  0x83   : > { %2775 = dma.hbm_to_vmem [thread:$0]  (!%p3483_p6), %s4235_s11, 16, %s515_s13, [#allocation15]  }
  0x84   : > { %s3339_s18 = smov [#allocation19]  }
  0x85   : > { %s541_s26 = sshll.u32 %s3339_s18, 4  ;;  %s542_s26 = int_to_ptr.vmem [resolvable:$true] %s541_s26 }
  0x86   : > { %s3199_s30 = scalar_lea.vmem %s542_s26, 16  ;;  %s3206_s8 = scalar_lea.vmem %s542_s26, 32 }
  0x87   : > { %p3200_p0 = scmp.ne.s32.totalorder %s542_s26, %s3199_s30  ;;  %p3207_p8 = scmp.lt.s32.totalorder %s542_s26, %s542_s26 }
  0x88   : > { %p3208_p9 = scmp.lt.s32.totalorder %s3206_s8, %s3199_s30 }
  0x89   : > { %p3202_p2 = pnand %p3200_p0, %p3491_p7 }
  0x8a   : > { %p3209_p10 = por %p3208_p9, %p3207_p8 }
  0x8b   : > { %p3203_p5 = pneg %p3202_p2 }
  0x8d   : > { %p3210_p11 = pnand %p3209_p10, %p3203_p5 }
  0x8f   : > { %3213 = shalt.err (!%p3210_p11)
}
  0x90   : > { %2781 = dma.hbm_to_vmem [thread:$0]  (!%p3483_p6), %s4238_s14, 16, %s542_s26, [#allocation18]  }
  0x91   : > { %s2332_s19 = sadd.s32 4294967294, %s3326_s24   ;;  %s3582_s0 = sadd.s32 1, %s3326_s24  }
  0x92   : > { %s67_s13 = ssub.s32 %s3326_s24, %s3582_s0  ;;  %s70_s4 = sadd.s32 1, %s3322_s23 }
  0x93   : > { %p68_p7 = scmp.eq.s32.totalorder %s67_s13, 0  ;;  %p77_p12 = scmp.ne.s32.totalorder %s3322_s23, %s3318_s22 }
  0x94   : > { %p78_p13 = scmp.eq.s32.totalorder %s3326_s24, 0  ;;  %p83_p1 = scmp.ne.s32.totalorder %s3318_s22, %s3314_s21 }
  0x95   : > { %s3593_s20 = scalar_select %p68_p7, %s3322_s23, %s70_s4  }
  0x96   : > { %p3595_p3 = por %p78_p13, %p77_p12  ;;  %p4284_p4 = scmp.eq.s32.totalorder %s3469_s27, 0 }
  0x97   : > { %p401_p0 = scmp.eq.s32.totalorder %s3469_s27, 1  ;;  %p407_p2 = scmp.eq.s32.totalorder %s2332_s19, 1 }
  0x98   : > { %p3601_p6 = por %p4284_p4, %p83_p1  ;;  %p2800_p5 = scmp.lt.s32.totalorder %s3326_s24, 2 }
  0x99   : > { %s565_s30 = sand.u32 1, %s3322_s23   ;;  %p3608_p8 = por %p401_p0, %p77_p12 }
  0x9a   : > { %s4285_s26 = scalar_select %p3601_p6, 1, 0 }
  0x9b   : > { %s4286_s8 = scalar_select %p3608_p8, 1, 0 }
  0x9c   : > { %p3612_p9 = por %p407_p2, %p83_p1  ;;  %s2345_s17 = sshll.u32 %s565_s30, 3 }
  0x9d   : > { %s2481_s13 = sshll.u32 %s3326_s24, 7  ;;  %s569_s19 = scalar_lea.vmem [#allocation2], %s2345_s17 }
  0x9e   : > { %s4287_s16 = scalar_select %p3612_p9, 1, 0 }
  0x9f   : > { %s3620_s2 = scalar_lea.hbm %s4225_s1, %s2481_s13  ;;  %s576_s3 = sshll.u32 %s569_s19, 4  ;;  %s3622_s3 = int_to_ptr.vmem [resolvable:$true] %s576_s3 }
  0xa0   : > { %p3626_p10 = pnand %p2800_p5, %p3595_p3  ;;  %s3630_s6 = scalar_lea.sflag [#allocation3], %s565_s30 }
  0xa1   : > { %s3214_s7 = scalar_lea.hbm %s3620_s2, 128  ;;  %s3219_s17 = scalar_lea.hbm %s4225_s1, 256 }
  0xa2   : > { %p3215_p11 = scmp.ne.s32.totalorder %s3620_s2, %s3214_s7  ;;  %p3216_p7 = pneg %p3626_p10 }
  0xa3   : > { %p3220_p1 = scmp.lt.s32.totalorder %s3620_s2, %s4225_s1  ;;  %p3221_p3 = scmp.lt.s32.totalorder %s3219_s17, %s3214_s7 }
  0xa4   : > { %p3217_p12 = pnand %p3216_p7, %p3215_p11 }
  0xa5   : > { %p3222_p4 = por %p3221_p3, %p3220_p1 }
  0xa6   : > { %p3218_p13 = pneg %p3217_p12 }
  0xa8   : > { %p3223_p0 = pnand %p3222_p4, %p3218_p13 }
  0xaa   : > { %3226 = shalt.err (!%p3223_p0)
}
  0xab   : > { %s3227_s18 = scalar_lea.vmem %s3622_s3, 128  ;;  %s3340_s30 = smov [#allocation2]  }
  0xac   : > { %p3228_p2 = scmp.ne.s32.totalorder %s3622_s3, %s3227_s18  ;;  %s3232_s9 = sshll.u32 %s3340_s30, 4  ;;  %s3233_s9 = int_to_ptr.vmem [resolvable:$false] %s3232_s9 }
  0xad   : > { %s3234_s29 = scalar_lea.vmem %s3233_s9, 256  ;;  %p3235_p12 = scmp.lt.s32.totalorder %s3622_s3, %s3233_s9 }
  0xae   : > { %p3230_p5 = pnand %p3228_p2, %p3216_p7  ;;  %p3236_p9 = scmp.lt.s32.totalorder %s3234_s29, %s3227_s18 }
  0xb0   : > { %p3231_p11 = pneg %p3230_p5  ;;  %p3237_p8 = por %p3236_p9, %p3235_p12 }
  0xb2   : > { %p3238_p6 = pnand %p3237_p8, %p3231_p11 }
  0xb4   : > { %3241 = shalt.err (!%p3238_p6)
}
  0xb5   : > { %s4289_s7 = smov 4   ;;  %p4290_p7 = scmp.ne.s32.totalorder %s4273_s28, 0 }
  0xb6   : > { %2785 = dma.hbm_to_vmem [thread:$0]  (!%p3626_p10), %s3620_s2, 128, %s3622_s3, %s3630_s6, %s4279_s25, %s4279_s25, %s4289_s7  }
  0xb7   : > { %588 = sbr.rel (%p4290_p7) target bundleno = 1539 (0x603), region = 84  ;;  %s3657_s13 = sand.u32 (!%p4290_p7), 1, %s3318_s22  }
  0xb8   : > { %s2349_s9 = sshll.u32 (!%p4290_p7), %s3657_s13, 3  ;;  %s591_s17 = scalar_lea.sflag (!%p4290_p7), [#allocation3], %s3657_s13 }
  0xb9   : > { %s3661_s4 = scalar_lea.vmem (!%p4290_p7), [#allocation2], %s2349_s9  ;;  %p4291_p6 = scmp.ne.s32.totalorder (!%p4290_p7), %s4285_s26, 0 }
  0xbc   : > { %3285 = dma.done.wait (%p4291_p6), %s591_s17, 128  }
  0xbd   : > { %3287 = vsyncadd (%p4291_p6), %s591_s17, 4294967168  ;;  %p4292_p8 = scmp.eq.s32.totalorder %s3469_s27, 0 }
  0xbf   : > { %3289 = dma.done.wait (%p4292_p8), [#allocation6], 2064   ;;  %p4293_p9 = pmov %p4292_p8 }
  0xc0   : > { %p4294_p10 = pmov %p4292_p8 }
  0xc1   : > { %3291 = vsyncadd (%p4293_p9), [#allocation6], 4294965232 }
  0xc2   : > { %3293 = dma.done.wait (%p4294_p10), [#allocation9], 272   ;;  %p4295_p13 = pmov %p4292_p8 }
  0xc3   : > { %p4296_p1 = pmov %p4292_p8 }
  0xc4   : > { %3295 = vsyncadd (%p4295_p13), [#allocation9], 4294967024 }
  0xc5   : > { %3297 = dma.done.wait (%p4296_p1), [#allocation12], 32   ;;  %p4297_p3 = pmov %p4296_p1 }
  0xc6   : > { %p4298_p4 = pmov %p4296_p1 }
  0xc7   : > { %3299 = vsyncadd (%p4297_p3), [#allocation12], 4294967264 }
  0xc8   : > { %3301 = dma.done.wait (%p4298_p4), [#allocation15], 32   ;;  %p4299_p0 = pmov %p4296_p1 }
  0xca   : > { %3303 = vsyncadd (%p4299_p0), [#allocation15], 4294967264  ;;  %p4300_p2 = pmov %p4299_p0 }
  0xcb   : > { %p4301_p5 = pmov %p4299_p0 }
  0xcc   : > { %3305 = dma.done.wait (%p4300_p2), [#allocation18], 1040  }
  0xcd   : > { %3307 = vsyncadd (%p4301_p5), [#allocation18], 4294966256  ;;  %v3341_v0 = vmov 0   ;;  %v3342_v1 = vmov 0.0   ;;  %vm3343_vm0 = vmmov 0   ;;  %v2879_v2 = vld [vmem:[#allocation5 + $0x78] sm:$0xff]   ;;  %v908_v56 = vlaneseq }
  0xce   : > { %2878 = vset.pattern.permute.xlu1 %v3341_v0  ;;  %2877 = vset.pattern.permute.xlu0 %v3341_v0  ;;  %s2361_s2 = sshll.u32 %s3469_s27, 1  ;;  %v2880_v3 = vld [vmem:[#allocation5 + $0x38] sm:$0xff]   ;;  %v2881_v4 = vld [vmem:[#allocation5 + $0x70] sm:$0xff]   ;;  %v2883_v6 = vld [vmem:[#allocation5 + $0x68] sm:$0xff]   ;;  %s4302_s28 = sld [smem:[#allocation28_spill]]  ;;  %vm1279_vm5 = vcmask 261120  }
  0xcf   : > { %2567 = vmatprep.subr.bf16.mxu1 %v3342_v1  ;;  %2583 = vmatprep.mubr.msk.bf16.mxu1 %vm3343_vm0, %v3342_v1  ;;  %v2882_v5 = vld [vmem:[#allocation5 + $0x30] sm:$0xff]   ;;  %p690_p11 = scmp.lt.s32.totalorder %s2361_s2, 3  ;;  %v2884_v7 = vld [vmem:[#allocation5 + $0x28] sm:$0xff]   ;;  %v2885_v8 = vld [vmem:[#allocation5 + $0x60] sm:$0xff]   ;;  %s4303_s5 = sld [smem:[#allocation31_spill]]  ;;  %v3805_v61 = vshrl.u32 %v908_v56, 7 }
  0xd0   : > { %2484 = vmatprep.subr.bf16.mxu0 %v2879_v2  ;;  %v2886_v9 = vld [vmem:[#allocation5 + $0x20] sm:$0xff]   ;;  %v2887_v10 = vld [vmem:[#allocation5 + $0x58] sm:$0xff]   ;;  %v2889_v12 = vld [vmem:[#allocation5 + $0x50] sm:$0xff]   ;;  %s4251_s6 = smov 120   ;;  %s4304_s19 = sld [smem:[#allocation37_spill]]  ;;  %vm1502_vm6 = vcmask 1043456  }
  0xd1   : > { %2485 = vmatpush3.bf16.msra.mxu0 %v2880_v3  ;;  %s4326_s2 = smov (!%p690_p11, %s2361_s2), 3  ;;  %v2888_v11 = vld [vmem:[#allocation5 + $0x18] sm:$0xff]   ;;  %v2890_v14 = vld [vmem:[#allocation5 + $0x10] sm:$0xff]   ;;  %v2891_v15 = vld [vmem:[#allocation5 + $0x48] sm:$0xff]   ;;  %vm910_vm1 = vcmp.lt.s32.totalorder %v3805_v61, 2  ;;  %vm932_vm2 = vcmp.lt.s32.totalorder %v3805_v61, 1 }
  0xd2   : > { %2486 = vmatprep.subr.bf16.mxu0 %v2881_v4  ;;  %s2482_s3 = sshll.u32 %s4326_s2, 3  ;;  %v2892_v16 = vld [vmem:[#allocation5 + $0x8] sm:$0xff]   ;;  %v2893_v17 = vld [vmem:[#allocation5 + $0x40] sm:$0xff]   ;;  %v904_v18 = vld [vmem:[%s4239_s15] sm:$0xff]  ;;  %vm954_vm3 = vcmp.lt.s32.totalorder %v3805_v61, 7  ;;  %vm976_vm4 = vcmp.lt.s32.totalorder %v3805_v61, 6 }
  0xd3   : > { %915 = vperm.xlu1 %2878, %v904_v18   ;;  %v2383_v19 = vld [vmem:[%s4239_s15 + $0x20] sm:$0xff]  ;;  %v2894_v20 = vld [vmem:[#allocation5] sm:$0xff]   ;;  %v905_v21 = vld [vmem:[%s4239_s15 + $0x8] sm:$0xff]  ;;  %s4252_s18 = smov 104   ;;  %s4257_s7 = smov 80   ;;  %vm1485_vm7 = vcmask 64512  }
  0xd4   : > { %s694_s25 = scalar_lea.vmem %s4302_s28, %s2482_s3  ;;  %894 = vperm.xlu0 %2877, %v2383_v19   ;;  %v2384_v23 = vld [vmem:[%s4239_s15 + $0x28] sm:$0xff]  ;;  %v2386_v25 = vld [vmem:[%s4239_s15 + $0x18] sm:$0xff]  ;;  %v2385_v27 = vld [vmem:[%s4239_s15 + $0x10] sm:$0xff]  ;;  %s4254_s9 = smov 88   ;;  %vm1554_vm8 = vcmask 1040384   ;;  %vm1550_vm9 = vcmask 15360  }
  0xd5   : > { %2487 = vmatpush3.bf16.msra.mxu0 %v2882_v5  ;;  %v2897_v13 = vld [vmem:[%s694_s25 + $0x4] ss:$8 sps:$4 sm:$0xff]   ;;  %v2895_v22 = vld [vmem:[%s694_s25] ss:$8 sps:$4 sm:$0xff]   ;;  %v2898_v24 = vld [vmem:[%s4303_s5 + $0x38] sm:$0xff]   ;;  %s4255_s25 = smov 96  }
  0xd6   : > { %2488 = vmatprep.subr.bf16.mxu0 %v2883_v6  ;;  %878 = vmatprep.mubr.bf16.mxu0 %v2897_v13  ;;  %v3712_v26 = vld [vmem:[#allocation17 + $0x38] sm:$0xff]   ;;  %v2899_v28 = vld [vmem:[%s4303_s5 + $0x30] sm:$0xff]   ;;  %v2388_v29 = vld [vmem:[%s4239_s15 + $0x38] sm:$0xff]  ;;  %s4259_s3 = smov 64   ;;  %s4256_s28 = smov 72   ;;  %vm2103_vm10 = vcmask 130048  }
  0xd7   : > { %920 = vperm.xlu1 %2878, %v905_v21   ;;  %2568 = vmatpush3.bf16.msra.mxu1 %v3712_v26  ;;  %v2387_v30 = vld [vmem:[%s4239_s15 + $0x30] sm:$0xff]  ;;  %v2900_v31 = vld [vmem:[%s4303_s5 + $0x28] sm:$0xff]   ;;  %v2389_v33 = vld [vmem:[%s4239_s15 + $0x40] sm:$0xff]  ;;  %s4261_s29 = smov 48   ;;  %s4258_s17 = smov 56   ;;  %vm2105_vm11 = vcmask 195584  }
  0xd8   : > { %899 = vperm.xlu0 %2877, %v2384_v23   ;;  %2569 = vmatprep.subr.bf16.mxu1 %v3342_v1  ;;  %v2390_v32 = vld [vmem:[%s4239_s15 + $0x48] sm:$0xff]  ;;  %v2901_v34 = vld [vmem:[%s4303_s5 + $0x20] sm:$0xff]   ;;  %v2902_v35 = vld [vmem:[%s4303_s5 + $0x18] sm:$0xff]   ;;  %s3354_s26 = smov 32   ;;  %s4260_s30 = smov 40   ;;  %vm2108_vm12 = vcmask 326656  }
  0xd9   : > { %2489 = vmatpush3.bf16.msra.mxu0 %v2884_v7  ;;  %v2903_v36 = vld [vmem:[%s4303_s5 + $0x10] sm:$0xff]   ;;  %v2904_v37 = vld [vmem:[%s4303_s5 + $0x8] sm:$0xff]   ;;  %v2905_v38 = vld [vmem:[%s4303_s5] sm:$0xff]   ;;  %s4307_s2 = smov 40   ;;  %vm2110_vm13 = vcmask 392192   ;;  %vm2112_vm14 = vcmask 457728  }
  0xda   : > { %2490 = vmatprep.subr.bf16.mxu0 %v2885_v8  ;;  %v3762_v39 = vld [vmem:[%s3661_s4] sm:$0xff]   ;;  %v3773_v41 = vld [vmem:[#allocation17 + $0x28] sm:$0xff]   ;;  %v2364_v50 = vld [vmem:[#allocation7] ss:$0 sm:$0xff]  ;;  %s4253_s4 = smov 112   ;;  %vm2114_vm15 = vcmask 523264  }
  0xdb   : > { %942 = vperm.xlu1 %2878, %v2386_v25   ;;  %v3769_v40 = vld [vmem:[#allocation17 + $0x30] sm:$0xff]   ;;  %v3777_v42 = vld [vmem:[#allocation17 + $0x20] sm:$0xff]   ;;  %v3781_v43 = vld [vmem:[#allocation17 + $0x18] sm:$0xff]   ;;  %p4318_p7 = scmp.ne.s32.totalorder %s4286_s8, 0 }
  0xdc   : > { %937 = vperm.xlu0 %2877, %v2385_v27   ;;  %2570 = vmatpush3.bf16.msra.mxu1 %v3769_v40  ;;  %v3784_v44 = vld [vmem:[#allocation17 + $0x10] sm:$0xff]   ;;  %v3788_v45 = vld [vmem:[#allocation17 + $0x8] sm:$0xff]   ;;  %v3792_v46 = vld [vmem:[#allocation17] sm:$0xff]  }
  0xdd   : > { %2491 = vmatpush3.bf16.msra.mxu0 %v2886_v9  ;;  %2571 = vmatprep.subr.bf16.mxu1 %v3342_v1  ;;  %v2916_v56 = vld [vmem:[#allocation10] sm:$0xff]  }
  0xde   : > { %2492 = vmatprep.subr.bf16.mxu0 %v2887_v10 }
  0xdf   : > { %964 = vperm.xlu1 %2878, %v2388_v29  }
  0xe0   : > { %959 = vperm.xlu0 %2877, %v2387_v30   ;;  %2572 = vmatpush3.bf16.msra.mxu1 %v3773_v41 }
  0xe1   : > { %2493 = vmatpush3.bf16.msra.mxu0 %v2888_v11  ;;  %2573 = vmatprep.subr.bf16.mxu1 %v3342_v1 }
  0xe2   : > { %2494 = vmatprep.subr.bf16.mxu0 %v2889_v12 }
  0xe3   : > { %986 = vperm.xlu1 %2878, %v2390_v32  }
  0xe4   : > { %981 = vperm.xlu0 %2877, %v2389_v33   ;;  %2574 = vmatpush3.bf16.msra.mxu1 %v3777_v42 }
  0xe5   : > { %2495 = vmatpush3.bf16.msra.mxu0 %v2890_v14  ;;  %2575 = vmatprep.subr.bf16.mxu1 %v3342_v1 }
  0xe6   : > { %2496 = vmatprep.subr.bf16.mxu0 %v2891_v15 }
  0xe8   : > { %2576 = vmatpush3.bf16.msra.mxu1 %v3781_v43 }
  0xe9   : > { %2497 = vmatpush3.bf16.msra.mxu0 %v2892_v16  ;;  %2577 = vmatprep.subr.bf16.mxu1 %v3342_v1 }
  0xea   : > { %2498 = vmatprep.subr.bf16.mxu0 %v2893_v17 }
  0xec   : > { %2578 = vmatpush3.bf16.msra.mxu1 %v3784_v44 }
  0xed   : > { %2499 = vmatpush3.bf16.msra.mxu0 %v2894_v20  ;;  %2579 = vmatprep.subr.bf16.mxu1 %v3342_v1 }
  0xee   : > { %2587 = vmatprep.subr.bf16.mxu0 %v3342_v1 }
  0xf0   : > { %879 = vmatmul.mubr.bf16.vlgmr.msra.gmra.mxu0 %v2895_v22  ;;  %2580 = vmatpush3.bf16.msra.mxu1 %v3788_v45 }
  0xf1   : > { %2588 = vmatpush3.bf16.msra.mxu0 %v2898_v24  ;;  %2603 = vmatprep.mubr.msk.bf16.mxu0 %vm3343_vm0, %v3342_v1 }
  0xf2   : > { %2589 = vmatprep.subr.bf16.mxu0 %v3342_v1  ;;  %2581 = vmatprep.subr.bf16.mxu1 %v3342_v1 }
  0xf4   : > { %2582 = vmatpush3.bf16.msra.mxu1 %v3792_v46 }
  0xf5   : > { %2590 = vmatpush3.bf16.msra.mxu0 %v2899_v28  ;;  %2607 = vmatprep.subr.bf16.mxu1 %v3342_v1 }
  0xf6   : > { %2591 = vmatprep.subr.bf16.mxu0 %v3342_v1 }
  0xf9   : > { %2592 = vmatpush3.bf16.msra.mxu0 %v2900_v31 }
  0xfa   : > { %2593 = vmatprep.subr.bf16.mxu0 %v3342_v1 }
  0xfd   : > { %2594 = vmatpush3.bf16.msra.mxu0 %v2901_v34 }
  0xfe   : > { %2595 = vmatprep.subr.bf16.mxu0 %v3342_v1 }
 0x101   : > { %2596 = vmatpush3.bf16.msra.mxu0 %v2902_v35 }
 0x102   : > { %2597 = vmatprep.subr.bf16.mxu0 %v3342_v1 }
 0x105   : > { %2598 = vmatpush3.bf16.msra.mxu0 %v2903_v36 }
 0x106   : > { %2599 = vmatprep.subr.bf16.mxu0 %v3342_v1 }
 0x109   : > { %2600 = vmatpush3.bf16.msra.mxu0 %v2904_v37 }
 0x10a   : > { %2601 = vmatprep.subr.bf16.mxu0 %v3342_v1 }
 0x10d   : > { %2602 = vmatpush3.bf16.msra.mxu0 %v2905_v38 }
 0x10e   : > { %2647 = vmatprep.subr.bf16.mxu0 %v3342_v1 }
 0x110   : > { %2604 = vmatmul.mubr.bf16.vlgmr.msra.gmra.mxu0 %v3762_v39 }
 0x111   : > { %2663 = vmatprep.mubr.msk.bf16.mxu0 %vm3343_vm0, %v3342_v1 }
 0x14e   : > { %v3797_v47 = vpop.permute.xlu1 %915 }
 0x14f   : > { %v3799_v48 = vpop.permute.xlu0 %894 }
 0x152   : > { %v3801_v52 = vpop.permute.xlu1 %920 }
 0x153   : > { %v3803_v53 = vpop.permute.xlu0 %899 }
 0x156   : > { %v3807_v62 = vpop.permute.xlu1 %942 }
 0x157   : > { %v3809_v63 = vpop.permute.xlu0 %937 }
 0x15a   : > { %v3815_v10 = vpop.permute.xlu1 %964 }
 0x15b   : > { %v3817_v11 = vpop.permute.xlu0 %959 }
 0x15e   : > { %v3843_v34 = vpop.permute.xlu1 %986 }
 0x15f   : > { %v3845_v35 = vpop.permute.xlu0 %981 }
 0x1b0   : > { %v2500_v49 = vpop.f32.mrf.mxu0 }
 0x1b2   : > { %v2501_v51 = vpop.f32.mrf.mxu0 }
 0x1b3   : > { %v2502_v54 = vadd.f32 %v2501_v51, %v2500_v49 }
 0x1b4   : > { %v2503_v55 = vpop.f32.mrf.mxu0 }
 0x1b5   : > { %v881_v57 = vadd.f32 %v2502_v54, %v2364_v50  ;;  %v2915_v54 = vld [vmem:[#allocation10 + $0x8] sm:$0xff]  }
 0x1b6   : > { %v2504_v58 = vpop.f32.mrf.mxu0 }
 0x1b7   : > { %v2505_v59 = vadd.f32 %v2504_v58, %v2503_v55  ;;  %v887_v60 = vmax.f32 %v881_v57, 0.0  ;;  %v2399_v57 = vld [vmem:[#allocation8] ss:$0 sm:$0xff] }
 0x1b9   : > { %v884_v0 = vadd.f32 %v2505_v59, %v2364_v50  ;;  %v906_v3 = vrot.slane %v887_v60, 6  ;;  %v930_v4 = vrot.slane %v887_v60, 7  ;;  %v952_v8 = vrot.slane %v887_v60, 1 }
 0x1ba   : > { %v902_v16 = vmul.f32 %v3799_v48, %v887_v60  ;;  %v974_v22 = vrot.slane %v887_v60, 2 }
 0x1bb   : > { %v888_v2 = vmax.f32 %v884_v0, 0.0 }
 0x1bd   : > { %v907_v5 = vrot.slane %v888_v2, 6  ;;  %v931_v6 = vrot.slane %v888_v2, 7  ;;  %v953_v7 = vrot.slane %v888_v2, 1  ;;  %v975_v9 = vrot.slane %v888_v2, 2 }
 0x1be   : > { %v903_v17 = vmul.f32 %v3803_v53, %v888_v2 }
 0x1bf   : > { %v911_v12 = vsel %vm910_vm1, %v906_v3, %v907_v5  ;;  %v912_v13 = vsel %vm910_vm1, %v907_v5, %v906_v3  ;;  %v933_v14 = vsel %vm932_vm2, %v930_v4, %v931_v6  ;;  %v934_v15 = vsel %vm932_vm2, %v931_v6, %v930_v4 }
 0x1c0   : > { %v923_v18 = vmul.f32 %v3797_v47, %v912_v13  ;;  %v924_v19 = vmul.f32 %v3801_v52, %v911_v12  ;;  %v955_v20 = vsel %vm954_vm3, %v952_v8, %v953_v7  ;;  %v956_v21 = vsel %vm954_vm3, %v953_v7, %v952_v8 }
 0x1c1   : > { %v945_v25 = vmul.f32 %v3809_v63, %v934_v15  ;;  %v946_v27 = vmul.f32 %v3807_v62, %v933_v14  ;;  %v977_v28 = vsel %vm976_vm4, %v974_v22, %v975_v9  ;;  %v978_v29 = vsel %vm976_vm4, %v975_v9, %v974_v22 }
 0x1c2   : > { %v925_v23 = vadd.f32 %v923_v18, %v902_v16  ;;  %v926_v24 = vadd.f32 %v924_v19, %v903_v17  ;;  %v967_v32 = vmul.f32 %v3817_v11, %v955_v20  ;;  %v968_v33 = vmul.f32 %v3815_v10, %v956_v21 }
 0x1c3   : > { %v989_v38 = vmul.f32 %v3845_v35, %v977_v28  ;;  %v990_v49 = vmul.f32 %v3843_v34, %v978_v29 }
 0x1c4   : > { %v947_v30 = vadd.f32 %v945_v25, %v925_v23  ;;  %v948_v31 = vadd.f32 %v946_v27, %v926_v24 }
 0x1c6   : > { %v969_v36 = vadd.f32 %v967_v32, %v947_v30  ;;  %v970_v37 = vadd.f32 %v968_v33, %v948_v31 }
 0x1c8   : > { %v991_v50 = vadd.f32 %v989_v38, %v969_v36  ;;  %v992_v51 = vadd.f32 %v990_v49, %v970_v37 }
 0x1ca   : > { %v1009_v55 = vpack.c.bf16 %v992_v51, %v991_v50 }
 0x1cc   : > { %2584 = vmatmul.mubr.bf16.vlgmr.msra.gmra.mxu1 %v1009_v55 }
 0x1cd   : > { %2608 = vmatpush3.bf16.msra.mxu1 %v2915_v54  ;;  %2611 = vmatprep.mubr.msk.bf16.mxu1 %vm3343_vm0, %v3342_v1 }
 0x1ce   : > { %2609 = vmatprep.subr.bf16.mxu1 %v3342_v1 }
 0x1d0   : > { %v1212_v58 = vpop.f32.mrf.mxu0 }
 0x1d1   : > { %2610 = vmatpush3.bf16.msra.mxu1 %v2916_v56  ;;  %v1213_v59 = vadd.f32 %v2399_v57, %v1212_v58  ;;  %v1603_v58 = vunpack.c.l.bf16 %v3762_v39 }
 0x1d2   : > { %v2605_v60 = vpop.f32.mrf.mxu0  ;;  %2615 = vmatprep.subr.bf16.mxu1 %v3342_v1 }
 0x1d3   : > { %v1219_v2 = vmax.f32 %v1213_v59, 0.0  ;;  %v1604_v60 = vunpack.c.h.bf16 %v3762_v39 }
 0x1d4   : > { %v1215_v0 = vpop.f32.mrf.mxu0 }
 0x1d5   : > { %v1216_v3 = vadd.f32 %v2399_v57, %v1215_v0  ;;  %v1223_v5 = vrot.slane %v1219_v2, 6  ;;  %v1231_v6 = vrot.slane %v1219_v2, 7  ;;  %v1239_v8 = vrot.slane %v1219_v2, 1 }
 0x1d6   : > { %v2606_v4 = vpop.f32.mrf.mxu0  ;;  %v1247_v14 = vrot.slane %v1219_v2, 2  ;;  %v1221_v20 = vmul.f32 %v1219_v2, %v3799_v48 }
 0x1d7   : > { %v1220_v7 = vmax.f32 %v1216_v3, 0.0 }
 0x1d9   : > { %v1224_v9 = vrot.slane %v1220_v7, 6  ;;  %v1232_v12 = vrot.slane %v1220_v7, 7  ;;  %v1240_v13 = vrot.slane %v1220_v7, 1  ;;  %v1248_v15 = vrot.slane %v1220_v7, 2 }
 0x1da   : > { %v1222_v21 = vmul.f32 %v1220_v7, %v3803_v53 }
 0x1db   : > { %v1225_v16 = vsel %vm910_vm1, %v1223_v5, %v1224_v9  ;;  %v1226_v17 = vsel %vm910_vm1, %v1224_v9, %v1223_v5  ;;  %v1233_v18 = vsel %vm932_vm2, %v1231_v6, %v1232_v12  ;;  %v1234_v19 = vsel %vm932_vm2, %v1232_v12, %v1231_v6 }
 0x1dc   : > { %v1227_v22 = vmul.f32 %v1226_v17, %v3797_v47  ;;  %v1228_v23 = vmul.f32 %v1225_v16, %v3801_v52  ;;  %v1241_v24 = vsel %vm954_vm3, %v1239_v8, %v1240_v13  ;;  %v1242_v25 = vsel %vm954_vm3, %v1240_v13, %v1239_v8 }
 0x1dd   : > { %v1235_v28 = vmul.f32 %v1234_v19, %v3809_v63  ;;  %v1236_v29 = vmul.f32 %v1233_v18, %v3807_v62  ;;  %v1249_v31 = vsel %vm976_vm4, %v1247_v14, %v1248_v15  ;;  %v1250_v32 = vsel %vm976_vm4, %v1248_v15, %v1247_v14 }
 0x1de   : > { %v1230_v27 = vadd.f32 %v1228_v23, %v1222_v21  ;;  %v1229_v30 = vadd.f32 %v1227_v22, %v1221_v20  ;;  %v1243_v37 = vmul.f32 %v1241_v24, %v3817_v11  ;;  %v1244_v38 = vmul.f32 %v1242_v25, %v3815_v10  ;;  %v2917_v23 = vld [vmem:[%s4304_s19 + $0x38] sm:$0xff]   ;;  %v2918_v24 = vld [vmem:[%s4304_s19 + $0x30] sm:$0xff]  }
 0x1df   : > { %v1251_v51 = vmul.f32 %v1249_v31, %v3845_v35  ;;  %v1252_v54 = vmul.f32 %v1250_v32, %v3843_v34  ;;  %2648 = vmatpush3.bf16.msra.mxu0 %v2917_v23  ;;  %v2921_v32 = vld [vmem:[%s4304_s19 + $0x18] sm:$0xff]  }
 0x1e0   : > { %v1238_v33 = vadd.f32 %v1236_v29, %v1230_v27  ;;  %v1237_v36 = vadd.f32 %v1235_v28, %v1229_v30  ;;  %2649 = vmatprep.subr.bf16.mxu0 %v3342_v1  ;;  %v2919_v27 = vld [vmem:[%s4304_s19 + $0x28] sm:$0xff]   ;;  %v2920_v29 = vld [vmem:[%s4304_s19 + $0x20] sm:$0xff]  }
 0x1e2   : > { %v1245_v49 = vadd.f32 %v1243_v37, %v1237_v36  ;;  %v1246_v50 = vadd.f32 %v1244_v38, %v1238_v33  ;;  %v2922_v33 = vld [vmem:[%s4304_s19 + $0x10] sm:$0xff]   ;;  %v2923_v37 = vld [vmem:[%s4304_s19 + $0x8] sm:$0xff]   ;;  %v2417_v38 = vld [vmem:[%s4239_s15 + $0x60] sm:$0xff] }
 0x1e3   : > { %2650 = vmatpush3.bf16.msra.mxu0 %v2918_v24  ;;  %v2415_v36 = vld [vmem:[%s4239_s15 + $0x50] sm:$0xff] }
 0x1e4   : > { %v1253_v55 = vadd.f32 %v1251_v51, %v1245_v49  ;;  %v1254_v56 = vadd.f32 %v1252_v54, %v1246_v50  ;;  %2651 = vmatprep.subr.bf16.mxu0 %v3342_v1  ;;  %v2416_v49 = vld [vmem:[%s4239_s15 + $0x58] sm:$0xff]  ;;  %v2924_v50 = vld [vmem:[%s4304_s19] sm:$0xff]   ;;  %v2418_v51 = vld [vmem:[%s4239_s15 + $0x68] sm:$0xff] }
 0x1e6   : > { %v1259_v57 = vpack.c.bf16 %v1254_v56, %v1253_v55 }
 0x1e7   : > { %2652 = vmatpush3.bf16.msra.mxu0 %v2919_v27 }
 0x1e8   : > { %2612 = vmatmul.mubr.msk.bf16.vlgmr.msra.gmra.mxu1 %vm1279_vm5, %v1259_v57  ;;  %2653 = vmatprep.subr.bf16.mxu0 %v3342_v1 }
 0x1e9   : > { %2617 = vmatprep.mubr.msk.bf16.mxu1 %vm3343_vm0, %v3342_v1 }
 0x1eb   : > { %2654 = vmatpush3.bf16.msra.mxu0 %v2920_v29 }
 0x1ec   : > { %2655 = vmatprep.subr.bf16.mxu0 %v3342_v1 }
 0x1ef   : > { %2656 = vmatpush3.bf16.msra.mxu0 %v2921_v32 }
 0x1f0   : > { %2657 = vmatprep.subr.bf16.mxu0 %v3342_v1 }
 0x1f3   : > { %2658 = vmatpush3.bf16.msra.mxu0 %v2922_v33 }
 0x1f4   : > { %2659 = vmatprep.subr.bf16.mxu0 %v3342_v1 }
 0x1f7   : > { %2660 = vmatpush3.bf16.msra.mxu0 %v2923_v37 }
 0x1f8   : > { %2661 = vmatprep.subr.bf16.mxu0 %v3342_v1 }
 0x1fb   : > { %2662 = vmatpush3.bf16.msra.mxu0 %v2924_v50 }
 0x1fc   : > { %2687 = vmatprep.subr.bf16.mxu0 %v3342_v1 }
 0x28c   : > { %v1092_v59 = vpop.f32.mrf.mxu1 }
 0x28d   : > { %v3884_v0 = vadd.f32 %v1603_v58, %v1092_v59 }
 0x28e   : > { %v2585_v2 = vpop.f32.mrf.mxu1 }
 0x28f   : > { %v1610_v7 = vrot.slane %v3884_v0, 7  ;;  %v1629_v8 = vrot.slane %v3884_v0, 1 }
 0x290   : > { %v1095_v3 = vpop.f32.mrf.mxu1 }
 0x291   : > { %v1334_v4 = vadd.f32 %v1095_v3, %v1092_v59  ;;  %v3886_v5 = vadd.f32 %v1604_v60, %v1095_v3 }
 0x292   : > { %v2586_v6 = vpop.f32.mrf.mxu1 }
 0x293   : > { %v1335_v9 = vrot.slane %v1334_v4, 4  ;;  %v1679_v12 = vpack.c.bf16 %v3886_v5, %v3884_v0  ;;  %v1611_v13 = vrot.slane %v3886_v5, 7  ;;  %v1630_v39 = vrot.slane %v3886_v5, 1  ;;  %v2936_v0 = vld [vmem:[%s4304_s19 + $0xa0] sm:$0xff]   ;;  %v2937_v5 = vld [vmem:[%s4304_s19 + $0x98] sm:$0xff]  }
 0x294   : > { %v3359_v6 = vmov 1983009808  }
 0x295   : > { %v1336_v14 = vadd.f32 %v1335_v9, %v1334_v4  ;;  %v3896_v15 = vsel %vm932_vm2, %v1611_v13, %v1610_v7  ;;  %v3900_v16 = vsel %vm954_vm3, %v1629_v8, %v1630_v39  ;;  %v3904_v17 = vsel %vm932_vm2, %v1610_v7, %v1611_v13 }
 0x296   : > { %v3908_v18 = vsel %vm954_vm3, %v1630_v39, %v1629_v8  ;;  %v1389_v7 = vunpack.c.l.s4 %v3359_v6 }
 0x297   : > { %v1337_v19 = vrot.slane %v1336_v14, 2 }
 0x298   : > { %v1390_v13 = vunpack.c.0.s8 %v1389_v7 }
 0x299   : > { %v1338_v20 = vadd.f32 %v1337_v19, %v1336_v14 }
 0x29b   : > { %v1339_v21 = vrot.slane %v1338_v20, 1 }
 0x29d   : > { %v3910_v22 = vadd.f32 %v1339_v21, %v1338_v20  ;;  %v1393_v20 = vsub.s32 %v1390_v13, %v3805_v61  ;;  %v3360_v21 = vmov 1934713408  }
 0x29e   : > { %v1421_v23 = vunpack.c.l.s4 %v3360_v21 }
 0x29f   : > { %1345 = vrot.lane.b32.xlu1 %v3910_v22, %s4253_s4  ;;  %1342 = vrot.lane.b32.xlu0 %v3910_v22, %s4251_s6  ;;  %s3357_s6 = smov 24   ;;  %s3358_s4 = smov 8  }
 0x2a3   : > { %1351 = vrot.lane.b32.xlu1 %v3910_v22, %s4255_s25  ;;  %1348 = vrot.lane.b32.xlu0 %v3910_v22, %s4252_s18  ;;  %s4310_s18 = smov 80   ;;  %s4316_s25 = smov 120  }
 0x2a7   : > { %1357 = vrot.lane.b32.xlu1 %v3910_v22, %s4257_s7  ;;  %1354 = vrot.lane.b32.xlu0 %v3910_v22, %s4254_s9  ;;  %s3356_s9 = smov 16   ;;  %s2360_s7 = sshll.u32 %s3657_s13, 4 }
 0x2a8   : > { %v3931_v25 = vpop.f32.mrf.mxu1 }
 0x2aa   : > { %v2613_v28 = vpop.f32.mrf.mxu1 }
 0x2ab   : > { %1363 = vrot.lane.b32.xlu1 %v3910_v22, %s4259_s3  ;;  %1360 = vrot.lane.b32.xlu0 %v3910_v22, %s4256_s28  ;;  %s4306_s28 = smov 48   ;;  %s4311_s3 = smov 72  }
 0x2ac   : > { %v3944_v30 = vpop.f32.mrf.mxu1 }
 0x2ae   : > { %v2614_v31 = vpop.f32.mrf.mxu1 }
 0x2af   : > { %1369 = vrot.lane.b32.xlu1 %v3910_v22, %s4261_s29  ;;  %1366 = vrot.lane.b32.xlu0 %v3910_v22, %s4258_s17  ;;  %s4305_s29 = sld [smem:[#allocation35_spill]]  ;;  %s4308_s17 = smov 64  }
 0x2b3   : > { %1375 = vrot.lane.b32.xlu1 %v3910_v22, %s3354_s26  ;;  %1372 = vrot.lane.b32.xlu0 %v3910_v22, %s4260_s30  ;;  %s4315_s30 = smov 104  }
 0x2b5   : > { %v1496_v54 = vld [vmem:[%s4305_s29] sm:$0xf]  ;;  %s4314_s29 = smov 112  }
 0x2b6   : > { %v1504_v55 = vsel %vm1502_vm6, %v1496_v54, 0  ;;  %vm2128_vm6 = vcmask 982016  }
 0x2b7   : > { %1381 = vrot.lane.b32.xlu1 %v3910_v22, %s3356_s9  ;;  %1378 = vrot.lane.b32.xlu0 %v3910_v22, %s3357_s6 }
 0x2b8   : > { %2616 = vmatpush3.bf16.msra.mxu1 %v1504_v55 }
 0x2b9   : > { %2621 = vmatprep.subr.bf16.mxu1 %v3342_v1 }
 0x2bb   : > { %1616 = vperm.xlu1 %2878, %v2415_v36   ;;  %1384 = vrot.lane.b32.xlu0 %v3910_v22, %s3358_s4  ;;  %v1422_v36 = vunpack.c.0.s8 %v1421_v23 }
 0x2bf   : > { %1635 = vperm.xlu1 %2878, %v2417_v38   ;;  %1621 = vperm.xlu0 %2877, %v2416_v49  }
 0x2c3   : > { %1640 = vperm.xlu0 %2877, %v2418_v51  }
 0x311   : > { %v1346_v56 = vpop.permute.xlu1 %1345  ;;  %v1343_v57 = vpop.permute.xlu0 %1342 }
 0x312   : > { %v1387_v28 = vcombine.low %v3910_v22, %v1346_v56 }
 0x314   : > { %v1394_v50 = vrot.slane %v1387_v28, %v1393_v20 }
 0x315   : > { %v1352_v58 = vpop.permute.xlu1 %1351  ;;  %v1349_v59 = vpop.permute.xlu0 %1348 }
 0x316   : > { %v1395_v24 = vcombine.low %v1343_v57, %v1349_v59 }
 0x318   : > { %v1402_v37 = vrot.slane %v1395_v24, %v1393_v20 }
 0x319   : > { %v1358_v60 = vpop.permute.xlu1 %1357  ;;  %v1355_v2 = vpop.permute.xlu0 %1354 }
 0x31a   : > { %v1403_v27 = vcombine.low %v1352_v58, %v1358_v60  ;;  %v1419_v6 = vcombine.low %v1394_v50, %v1402_v37 }
 0x31c   : > { %v1410_v38 = vrot.slane %v1403_v27, %v1393_v20 }
 0x31d   : > { %v1364_v3 = vpop.permute.xlu1 %1363  ;;  %v1361_v4 = vpop.permute.xlu0 %1360 }
 0x31e   : > { %v1411_v39 = vcombine.low %v1355_v2, %v1361_v4  ;;  %v1425_v4 = vsub.s32 %v1422_v36, %v3805_v61 }
 0x320   : > { %v1418_v29 = vrot.slane %v1411_v39, %v1393_v20  ;;  %v1426_v7 = vrot.slane %v1419_v6, %v1425_v4 }
 0x321   : > { %v1370_v8 = vpop.permute.xlu1 %1369  ;;  %v1367_v9 = vpop.permute.xlu0 %1366 }
 0x322   : > { %v1436_v49 = vcombine.low %v1364_v3, %v1370_v8  ;;  %v1427_v51 = vcombine.low %v1410_v38, %v1418_v29 }
 0x324   : > { %v1443_v57 = vrot.slane %v1436_v49, %v1393_v20  ;;  %v1434_v59 = vrot.slane %v1427_v51, %v1425_v4  ;;  %v1498_v51 = vld [vmem:[#allocation13] sm:$0x1] }
 0x325   : > { %v1376_v14 = vpop.permute.xlu1 %1375  ;;  %v1373_v19 = vpop.permute.xlu0 %1372 }
 0x326   : > { %v1444_v31 = vcombine.low %v1367_v9, %v1373_v19  ;;  %v1435_v13 = vcombine.low %v1426_v7, %v1434_v59  ;;  %v2927_v59 = vld [vmem:[%s4304_s19 + $0x68] sm:$0xff]  }
 0x327   : > { %v2931_v7 = vld [vmem:[%s4304_s19 + $0x48] sm:$0xff]  }
 0x328   : > { %v1451_v54 = vrot.slane %v1444_v31, %v1393_v20 }
 0x329   : > { %v1382_v32 = vpop.permute.xlu1 %1381  ;;  %v1379_v33 = vpop.permute.xlu0 %1378 }
 0x32a   : > { %v1452_v55 = vcombine.low %v1376_v14, %v1382_v32  ;;  %v1468_v22 = vcombine.low %v1443_v57, %v1451_v54  ;;  %v1486_v14 = vsel %vm1485_vm7, %v1435_v13, 0.0  ;;  %v2933_v13 = vld [vmem:[%s4304_s19 + $0xb8] sm:$0xff]  }
 0x32c   : > { %v1459_v56 = vrot.slane %v1452_v55, %v1393_v20  ;;  %v1475_v39 = vrot.slane %v1468_v22, %v1425_v4  ;;  %v2928_v22 = vld [vmem:[%s4304_s19 + $0x60] sm:$0xff]  }
 0x32d   : > { %v1385_v2 = vpop.permute.xlu0 %1384 }
 0x32e   : > { %v1460_v58 = vcombine.low %v1379_v33, %v1385_v2 }
 0x330   : > { %v1467_v60 = vrot.slane %v1460_v58, %v1393_v20  ;;  %v2926_v58 = vld [vmem:[%s4304_s19 + $0x70] sm:$0xff]  }
 0x332   : > { %v1476_v9 = vcombine.low %v1459_v56, %v1467_v60  ;;  %v2929_v56 = vld [vmem:[%s4304_s19 + $0x58] sm:$0xff]   ;;  %v2930_v60 = vld [vmem:[%s4304_s19 + $0x50] sm:$0xff]  }
 0x334   : > { %v1483_v19 = vrot.slane %v1476_v9, %v1425_v4  ;;  %v2932_v9 = vld [vmem:[%s4304_s19 + $0x40] sm:$0xff]  }
 0x336   : > { %v1484_v3 = vcombine.low %v1475_v39, %v1483_v19  ;;  %v1617_v8 = vpop.permute.xlu1 %1616  ;;  %v2934_v39 = vld [vmem:[%s4304_s19 + $0xb0] sm:$0xff]   ;;  %v2935_v19 = vld [vmem:[%s4304_s19 + $0xa8] sm:$0xff]  }
 0x337   : > { %v1624_v27 = vmul.f32 %v1617_v8, %v3896_v15  ;;  %v2940_v8 = vld [vmem:[%s4304_s19 + $0x80] sm:$0xff]  }
 0x338   : > { %v1487_v21 = vsel %vm1485_vm7, %v1484_v3, 0.0  ;;  %v2939_v3 = vld [vmem:[%s4304_s19 + $0x88] sm:$0xff]  }
 0x339   : > { %v1488_v23 = vadd.f32 %v1487_v21, %v1486_v14  ;;  %v1549_v14 = vld [vmem:[#allocation16] sm:$0x1] }
 0x33a   : > { %v1622_v24 = vpop.permute.xlu0 %1621  ;;  %v1636_v20 = vpop.permute.xlu1 %1635 }
 0x33b   : > { %v1625_v28 = vmul.f32 %v1622_v24, %v3904_v17  ;;  %v1489_v29 = vrot.slane %v1488_v23, 4  ;;  %v4002_v36 = vmul.f32 %v1636_v20, %v3900_v16 }
 0x33d   : > { %v1661_v31 = vpack.c.bf16 %v1625_v28, %v1624_v27  ;;  %v1490_v32 = vadd.f32 %v1489_v29, %v1488_v23 }
 0x33e   : > { %v1641_v33 = vpop.permute.xlu0 %1640 }
 0x33f   : > { %v4005_v37 = vmul.f32 %v1641_v33, %v3908_v18  ;;  %2664 = vmatmul.mubr.bf16.vlgmr.msra.gmra.mxu0 %v1661_v31  ;;  %v1491_v38 = vrot.slane %v1490_v32, 2 }
 0x340   : > { %2688 = vmatpush3.bf16.msra.mxu0 %v3712_v26  ;;  %2703 = vmatprep.mubr.msk.bf16.mxu0 %vm3343_vm0, %v3342_v1  ;;  %v1547_v26 = vld [vmem:[#allocation14] sm:$0x1] }
 0x341   : > { %v1875_v15 = vpack.c.bf16 %v4005_v37, %v4002_v36  ;;  %v1492_v17 = vadd.f32 %v1491_v38, %v1490_v32  ;;  %2689 = vmatprep.subr.bf16.mxu0 %v3342_v1 }
 0x343   : > { %v1493_v49 = vrot.slane %v1492_v17, 1 }
 0x344   : > { %2690 = vmatpush3.bf16.msra.mxu0 %v3769_v40  ;;  %v1556_v40 = vsel %vm1554_vm8, %v1547_v26, 0 }
 0x345   : > { %v1494_v16 = vadd.f32 %v1493_v49, %v1492_v17  ;;  %2691 = vmatprep.subr.bf16.mxu0 %v3342_v1  ;;  %v2475_v49 = vld [vmem:[#allocation19] ss:$0 sm:$0xff] }
 0x347   : > { %v1495_v18 = vmul.f32 0.00390625, %v1494_v16 }
 0x348   : > { %2692 = vmatpush3.bf16.msra.mxu0 %v3773_v41 }
 0x349   : > { %v1497_v50 = vpack.c.bf16 %v1495_v18, %v1495_v18  ;;  %2693 = vmatprep.subr.bf16.mxu0 %v3342_v1 }
 0x34b   : > { %2618 = vmatmul.mubr.msk.bf16.vlgmr.msra.gmra.mxu1 %vm1485_vm7, %v1497_v50 }
 0x34c   : > { %2623 = vmatprep.mubr.msk.bf16.mxu1 %vm3343_vm0, %v3342_v1  ;;  %2694 = vmatpush3.bf16.msra.mxu0 %v3777_v42 }
 0x34d   : > { %2695 = vmatprep.subr.bf16.mxu0 %v3342_v1  ;;  %2622 = vmatpush3.bf16.msra.mxu1 %v1556_v40 }
 0x34e   : > { %2627 = vmatprep.subr.bf16.mxu1 %v3342_v1 }
 0x350   : > { %2696 = vmatpush3.bf16.msra.mxu0 %v3781_v43 }
 0x351   : > { %2697 = vmatprep.subr.bf16.mxu0 %v3342_v1 }
 0x354   : > { %2698 = vmatpush3.bf16.msra.mxu0 %v3784_v44 }
 0x355   : > { %2699 = vmatprep.subr.bf16.mxu0 %v3342_v1 }
 0x358   : > { %2700 = vmatpush3.bf16.msra.mxu0 %v3788_v45 }
 0x359   : > { %2701 = vmatprep.subr.bf16.mxu0 %v3342_v1 }
 0x35c   : > { %2702 = vmatpush3.bf16.msra.mxu0 %v3792_v46  ;;  %v2925_v46 = vld [vmem:[%s4304_s19 + $0x78] sm:$0xff]  }
 0x3ff   : > { %v4030_v41 = vpop.f32.mrf.mxu0 }
 0x401   : > { %v2665_v42 = vpop.f32.mrf.mxu0 }
 0x403   : > { %v4032_v43 = vpop.f32.mrf.mxu0 }
 0x405   : > { %v2666_v44 = vpop.f32.mrf.mxu0 }
 0x40b   : > { %v1540_v54 = vpop.f32.mrf.mxu1 }
 0x40c   : > { %v1541_v55 = vadd.f32 %v1540_v54, %v1498_v51 }
 0x40d   : > { %v2619_v45 = vpop.f32.mrf.mxu1 }
 0x40e   : > { %v1546_v2 = vmax.f32 %v1541_v55, 0.0 }
 0x40f   : > { %v1543_v4 = vpop.f32.mrf.mxu1 }
 0x410   : > { %v1548_v6 = vpack.c.bf16 %v1546_v2, %v1546_v2 }
 0x411   : > { %v2620_v57 = vpop.f32.mrf.mxu1 }
 0x412   : > { %2624 = vmatmul.mubr.msk.bf16.vlgmr.msra.gmra.mxu1 %vm1550_vm9, %v1548_v6 }
 0x413   : > { %2628 = vmatpush3.bf16.msra.mxu1 %v2925_v46  ;;  %2643 = vmatprep.mubr.msk.bf16.mxu1 %vm3343_vm0, %v3342_v1 }
 0x414   : > { %2629 = vmatprep.subr.bf16.mxu1 %v3342_v1 }
 0x417   : > { %2630 = vmatpush3.bf16.msra.mxu1 %v2926_v58 }
 0x418   : > { %2631 = vmatprep.subr.bf16.mxu1 %v3342_v1 }
 0x41b   : > { %2632 = vmatpush3.bf16.msra.mxu1 %v2927_v59 }
 0x41c   : > { %2633 = vmatprep.subr.bf16.mxu1 %v3342_v1 }
 0x41f   : > { %2634 = vmatpush3.bf16.msra.mxu1 %v2928_v22 }
 0x420   : > { %2635 = vmatprep.subr.bf16.mxu1 %v3342_v1 }
 0x423   : > { %2636 = vmatpush3.bf16.msra.mxu1 %v2929_v56 }
 0x424   : > { %2637 = vmatprep.subr.bf16.mxu1 %v3342_v1 }
 0x427   : > { %2638 = vmatpush3.bf16.msra.mxu1 %v2930_v60 }
 0x428   : > { %2639 = vmatprep.subr.bf16.mxu1 %v3342_v1 }
 0x42b   : > { %2640 = vmatpush3.bf16.msra.mxu1 %v2931_v7 }
 0x42c   : > { %2641 = vmatprep.subr.bf16.mxu1 %v3342_v1 }
 0x42f   : > { %2642 = vmatpush3.bf16.msra.mxu1 %v2932_v9 }
 0x430   : > { %2667 = vmatprep.subr.bf16.mxu1 %v3342_v1 }
 0x432   : > { %2644 = vmatmul.mubr.bf16.vlgmr.msra.gmra.mxu1 %v1679_v12  ;;  %v2938_v12 = vld [vmem:[%s4304_s19 + $0x90] sm:$0xff]  }
 0x433   : > { %2668 = vmatpush3.bf16.msra.mxu1 %v2933_v13  ;;  %2683 = vmatprep.mubr.msk.bf16.mxu1 %vm3343_vm0, %v3342_v1  ;;  %vm2116_vm0 = vcmask 588800  }
 0x434   : > { %2669 = vmatprep.subr.bf16.mxu1 %v3342_v1 }
 0x437   : > { %2670 = vmatpush3.bf16.msra.mxu1 %v2934_v39 }
 0x438   : > { %2671 = vmatprep.subr.bf16.mxu1 %v3342_v1 }
 0x43b   : > { %2672 = vmatpush3.bf16.msra.mxu1 %v2935_v19 }
 0x43c   : > { %2673 = vmatprep.subr.bf16.mxu1 %v3342_v1 }
 0x43f   : > { %2674 = vmatpush3.bf16.msra.mxu1 %v2936_v0 }
 0x440   : > { %2675 = vmatprep.subr.bf16.mxu1 %v3342_v1 }
 0x443   : > { %2676 = vmatpush3.bf16.msra.mxu1 %v2937_v5 }
 0x444   : > { %2677 = vmatprep.subr.bf16.mxu1 %v3342_v1 }
 0x447   : > { %2678 = vmatpush3.bf16.msra.mxu1 %v2938_v12 }
 0x448   : > { %2679 = vmatprep.subr.bf16.mxu1 %v3342_v1 }
 0x44b   : > { %2680 = vmatpush3.bf16.msra.mxu1 %v2939_v3 }
 0x44c   : > { %2681 = vmatprep.subr.bf16.mxu1 %v3342_v1 }
 0x44f   : > { %2682 = vmatpush3.bf16.msra.mxu1 %v2940_v8 }
 0x452   : > { %2684 = vmatmul.mubr.bf16.vlgmr.msra.gmra.mxu1 %v1875_v15 }
 0x4d2   : > { %v1592_v21 = vpop.f32.mrf.mxu1 }
 0x4d3   : > { %v1593_v23 = vadd.f32 %v1592_v21, %v1549_v14 }
 0x4d4   : > { %v2625_v24 = vpop.f32.mrf.mxu1 }
 0x4d5   : > { %v1598_v27 = vsub.f32 0.0, %v1593_v23 }
 0x4d6   : > { %v1595_v28 = vpop.f32.mrf.mxu1 }
 0x4d7   : > { %v1599_v29 = vmul.f32 1.442695, %v1598_v27 }
 0x4d8   : > { %v2626_v20 = vpop.f32.mrf.mxu1 }
 0x4d9   : > { %2942 = vpow2.f32 %v1599_v29  ;;  %v2409_v29 = vld [vmem:[#allocation11] ss:$0 sm:$0xff] }
 0x4e6   : > { %v2943_v31 = vpop.eup %2942 }
 0x4e7   : > { %v1601_v32 = vadd.f32 1.0, %v2943_v31  ;;  %v1318_v31 = vadd.f32 %v2409_v29, %v3931_v25 }
 0x4e9   : > { %2944 = vrcp.f32 %v1601_v32 }
 0x4f2   : > { %v1762_v33 = vpop.f32.mrf.mxu1 }
 0x4f3   : > { %v1852_v37 = vadd.f32 %v4030_v41, %v1762_v33  ;;  %v1324_v33 = vsub.f32 0.0, %v1318_v31 }
 0x4f4   : > { %v2645_v38 = vpop.f32.mrf.mxu1 }
 0x4f6   : > { %v4107_v1 = vpop.eup %2944  ;;  %v1765_v17 = vpop.f32.mrf.mxu1 }
 0x4f7   : > { %2060 = vrot.lane.b32.xlu0 %v4107_v1, %s3356_s9  ;;  %2057 = vrot.lane.b32.xlu1 %v4107_v1, %s3358_s4  ;;  %s4309_s9 = smov 56   ;;  %v1855_v50 = vadd.f32 %v4032_v43, %v1765_v17 }
 0x4f8   : > { %v2646_v36 = vpop.f32.mrf.mxu1 }
 0x4fb   : > { %2066 = vrot.lane.b32.xlu0 %v4107_v1, %s3354_s26  ;;  %2063 = vrot.lane.b32.xlu1 %v4107_v1, %s3357_s6  ;;  %s4312_s26 = smov 96   ;;  %s4313_s6 = smov 88  }
 0x4ff   : > { %2072 = vrot.lane.b32.xlu0 %v4107_v1, %s4306_s28  ;;  %2069 = vrot.lane.b32.xlu1 %v4107_v1, %s4307_s2  ;;  %s688_s28 = scalar_lea.vmem [#allocation20], %s2360_s7 }
 0x500   : > { %s2152_s2 = sshll.u32 %s688_s28, 4  ;;  %s4175_s2 = int_to_ptr.vmem [resolvable:$true] %s2152_s2 }
 0x503   : > { %2078 = vrot.lane.b32.xlu0 %v4107_v1, %s4308_s17  ;;  %2075 = vrot.lane.b32.xlu1 %v4107_v1, %s4309_s9  ;;  %s2483_s17 = sshll.u32 %s3469_s27, 8  ;;  %s3361_s27 = smov [#allocation20]  }
 0x507   : > { %2084 = vrot.lane.b32.xlu0 %v4107_v1, %s4310_s18  ;;  %2081 = vrot.lane.b32.xlu1 %v4107_v1, %s4311_s3  ;;  %s4317_s3 = sld [smem:[#allocation38_spill]] }
 0x50b   : > { %2090 = vrot.lane.b32.xlu0 %v4107_v1, %s4312_s26  ;;  %2087 = vrot.lane.b32.xlu1 %v4107_v1, %s4313_s6  ;;  %s2139_s6 = scalar_lea.sflag [#allocation4], %s3657_s13 }
 0x50d   : > { %s4180_s26 = scalar_lea.hbm %s4317_s3, %s2483_s17 }
 0x50f   : > { %2096 = vrot.lane.b32.xlu0 %v4107_v1, %s4314_s29  ;;  %2093 = vrot.lane.b32.xlu1 %v4107_v1, %s4315_s30  ;;  %s3242_s29 = scalar_lea.vmem %s4175_s2, 256  ;;  %s3246_s30 = sshll.u32 %s3361_s27, 4  ;;  %s3247_s30 = int_to_ptr.vmem [resolvable:$false] %s3246_s30 }
 0x510   : > { %p3243_p12 = scmp.ne.s32.totalorder %s4175_s2, %s3242_s29  ;;  %p3249_p9 = scmp.lt.s32.totalorder %s4175_s2, %s3247_s30 }
 0x512   : > { %v1958_v15 = vpop.f32.mrf.mxu1  ;;  %p3244_p6 = pnand %p3243_p12, %p4318_p7 }
 0x513   : > { %v1965_v16 = vadd.f32 %v1958_v15, %v1852_v37  ;;  %2099 = vrot.lane.b32.xlu1 %v4107_v1, %s4316_s25  ;;  %s3248_s25 = scalar_lea.vmem %s3247_s30, 512 }
 0x514   : > { %v2685_v18 = vpop.f32.mrf.mxu1  ;;  %p3245_p8 = pneg %p3244_p6  ;;  %p3250_p10 = scmp.lt.s32.totalorder %s3248_s25, %s3242_s29 }
 0x515   : > { %v1974_v26 = vadd.f32 %v2475_v49, %v1965_v16 }
 0x516   : > { %v1961_v40 = vpop.f32.mrf.mxu1  ;;  %p3251_p13 = por %p3250_p10, %p3249_p9 }
 0x517   : > { %v1966_v42 = vadd.f32 %v1961_v40, %v1855_v50  ;;  %v1976_v51 = vmax.f32 %v1974_v26, 0.0 }
 0x518   : > { %v2686_v44 = vpop.f32.mrf.mxu1  ;;  %p3252_p1 = pnand %p3251_p13, %p3245_p8 }
 0x519   : > { %v1975_v54 = vadd.f32 %v2475_v49, %v1966_v42  ;;  %v1980_v45 = vrot.slane %v1976_v51, 6  ;;  %v1988_v2 = vrot.slane %v1976_v51, 7  ;;  %v1996_v6 = vrot.slane %v1976_v51, 1 }
 0x51a   : > { %v1978_v56 = vmul.f32 %v1976_v51, %v3799_v48  ;;  %v2004_v13 = vrot.slane %v1976_v51, 2 }
 0x51b   : > { %v1977_v55 = vmax.f32 %v1975_v54, 0.0 }
 0x51d   : > { %v1981_v4 = vrot.slane %v1977_v55, 6  ;;  %v1989_v41 = vrot.slane %v1977_v55, 7  ;;  %v1997_v46 = vrot.slane %v1977_v55, 1  ;;  %v2005_v57 = vrot.slane %v1977_v55, 2 }
 0x51e   : > { %v1979_v60 = vmul.f32 %v1977_v55, %v3803_v53 }
 0x51f   : > { %v1982_v58 = vsel %vm910_vm1, %v1980_v45, %v1981_v4  ;;  %v1983_v43 = vsel %vm910_vm1, %v1981_v4, %v1980_v45  ;;  %v1990_v59 = vsel %vm932_vm2, %v1988_v2, %v1989_v41  ;;  %v1991_v22 = vsel %vm932_vm2, %v1989_v41, %v1988_v2 }
 0x520   : > { %v1984_v7 = vmul.f32 %v1983_v43, %v3797_v47  ;;  %v1985_v9 = vmul.f32 %v1982_v58, %v3801_v52  ;;  %v1998_v39 = vsel %vm954_vm3, %v1996_v6, %v1997_v46  ;;  %v1999_v19 = vsel %vm954_vm3, %v1997_v46, %v1996_v6 }
 0x521   : > { %v1992_v12 = vmul.f32 %v1991_v22, %v3809_v63  ;;  %v1993_v3 = vmul.f32 %v1990_v59, %v3807_v62  ;;  %v2006_v48 = vsel %vm976_vm4, %v2004_v13, %v2005_v57  ;;  %v2007_v47 = vsel %vm976_vm4, %v2005_v57, %v2004_v13 }
 0x522   : > { %v1986_v0 = vadd.f32 %v1984_v7, %v1978_v56  ;;  %v1987_v5 = vadd.f32 %v1985_v9, %v1979_v60  ;;  %v2000_v8 = vmul.f32 %v1998_v39, %v3817_v11  ;;  %v2001_v14 = vmul.f32 %v1999_v19, %v3815_v10 }
 0x523   : > { %v2008_v24 = vmul.f32 %v2006_v48, %v3845_v35  ;;  %v2009_v63 = vmul.f32 %v2007_v47, %v3843_v34  ;;  %v1321_v11 = vadd.f32 %v2409_v29, %v3944_v30  ;;  %v1326_v10 = vmul.f32 1.442695, %v1324_v33 }
 0x524   : > { %v1994_v52 = vadd.f32 %v1992_v12, %v1986_v0  ;;  %v1995_v53 = vadd.f32 %v1993_v3, %v1987_v5  ;;  %vm2118_vm1 = vcmask 654336   ;;  %vm2120_vm2 = vcmask 719872  }
 0x525   : > { %v1325_v17 = vsub.f32 0.0, %v1321_v11  ;;  %2946 = vpow2.f32 %v1326_v10  ;;  %vm2122_vm3 = vcmask 785408   ;;  %vm2124_vm4 = vcmask 850944  }
 0x526   : > { %v2002_v21 = vadd.f32 %v2000_v8, %v1994_v52  ;;  %v2003_v23 = vadd.f32 %v2001_v14, %v1995_v53  ;;  %v2132_v60 = vsub.s32 0, %v3805_v61 }
 0x527   : > { %v1328_v35 = vmul.f32 1.442695, %v1325_v17 }
 0x528   : > { %v2010_v27 = vadd.f32 %v2008_v24, %v2002_v21  ;;  %v2011_v62 = vadd.f32 %v2009_v63, %v2003_v23 }
 0x529   : > { %2948 = vpow2.f32 %v1328_v35 }
 0x52a   : > { %v2012_v28 = vpack.c.bf16 %v2011_v62, %v2010_v27 }
 0x52c   : > { %2704 = vmatmul.mubr.bf16.vlgmr.msra.gmra.mxu0 %v2012_v28 }
 0x532   : > { %v2947_v40 = vpop.eup %2946 }
 0x536   : > { %v2949_v55 = vpop.eup %2948 }
 0x537   : > { %v1331_v4 = vadd.f32 1.0, %v2949_v55 }
 0x569   : > { %v2058_v20 = vpop.permute.xlu1 %2057  ;;  %v2061_v32 = vpop.permute.xlu0 %2060 }
 0x56a   : > { %v2102_v34 = vsel %vm1485_vm7, %v4107_v1, %v2058_v20  ;;  %v1330_v1 = vadd.f32 1.0, %v2947_v40 }
 0x56b   : > { %v2104_v25 = vsel %vm2103_vm10, %v2102_v34, %v2061_v32 }
 0x56c   : > { %2950 = vrcp.f32 %v1330_v1 }
 0x56d   : > { %v2064_v38 = vpop.permute.xlu1 %2063  ;;  %v2067_v36 = vpop.permute.xlu0 %2066  ;;  %2952 = vrcp.f32 %v1331_v4 }
 0x56e   : > { %v2106_v16 = vsel %vm2105_vm11, %v2104_v25, %v2064_v38 }
 0x56f   : > { %v2107_v30 = vsel %vm1279_vm5, %v2106_v16, %v2067_v36  ;;  %vm2126_vm5 = vcmask 916480  }
 0x571   : > { %v2070_v37 = vpop.permute.xlu1 %2069  ;;  %v2073_v15 = vpop.permute.xlu0 %2072 }
 0x572   : > { %v2109_v26 = vsel %vm2108_vm12, %v2107_v30, %v2070_v37 }
 0x573   : > { %v2111_v42 = vsel %vm2110_vm13, %v2109_v26, %v2073_v15 }
 0x575   : > { %v2076_v49 = vpop.permute.xlu1 %2075  ;;  %v2079_v18 = vpop.permute.xlu0 %2078 }
 0x576   : > { %v2113_v44 = vsel %vm2112_vm14, %v2111_v42, %v2076_v49 }
 0x577   : > { %v2115_v45 = vsel %vm2114_vm15, %v2113_v44, %v2079_v18 }
 0x579   : > { %v2082_v50 = vpop.permute.xlu1 %2081  ;;  %v2085_v51 = vpop.permute.xlu0 %2084 }
 0x57a   : > { %v2117_v2 = vsel %vm2116_vm0, %v2115_v45, %v2082_v50  ;;  %v2951_v9 = vpop.eup %2950 }
 0x57b   : > { %v2119_v46 = vsel %vm2118_vm1, %v2117_v2, %v2085_v51  ;;  %v2953_v12 = vpop.eup %2952 }
 0x57d   : > { %v2088_v54 = vpop.permute.xlu1 %2087  ;;  %v2091_v41 = vpop.permute.xlu0 %2090 }
 0x57e   : > { %v2121_v57 = vsel %vm2120_vm2, %v2119_v46, %v2088_v54 }
 0x57f   : > { %v2123_v58 = vsel %vm2122_vm3, %v2121_v57, %v2091_v41 }
 0x581   : > { %v2094_v6 = vpop.permute.xlu1 %2093  ;;  %v2097_v43 = vpop.permute.xlu0 %2096 }
 0x582   : > { %v2125_v59 = vsel %vm2124_vm4, %v2123_v58, %v2094_v6 }
 0x583   : > { %v2127_v56 = vsel %vm2126_vm5, %v2125_v59, %v2097_v43 }
 0x585   : > { %v2100_v22 = vpop.permute.xlu1 %2099 }
 0x586   : > { %v2129_v7 = vsel %vm2128_vm6, %v2127_v56, %v2100_v22 }
 0x587   : > { %v2133_v39 = vrot.slane %v2129_v7, %v2132_v60 }
 0x5ec   : > { %v2047_v13 = vpop.f32.mrf.mxu0 }
 0x5ed   : > { %v2054_v19 = vmul.f32 %v2951_v9, %v2047_v13 }
 0x5ee   : > { %v2705_v0 = vpop.f32.mrf.mxu0 }
 0x5ef   : > { %v2134_v5 = vmul.f32 %v2133_v39, %v2054_v19 }
 0x5f0   : > { %v2050_v3 = vpop.f32.mrf.mxu0 }
 0x5f1   : > { %2136 = vst [vmem:[%s688_s28] sm:$0xff] %v2134_v5  ;;  %v2055_v48 = vmul.f32 %v2953_v12, %v2050_v3 }
 0x5f2   : > { %v2706_v61 = vpop.f32.mrf.mxu0 }
 0x5f3   : > { %v2135_v47 = vmul.f32 %v2133_v39, %v2055_v48 }
 0x5f5   : > { %2137 = vst [vmem:[%s688_s28 + $0x8] sm:$0xff] %v2135_v47 }
 0x5f6   : > { %3255 = shalt.err (!%p3252_p1)
}
 0x5f7   : > { %s3256_s7 = scalar_lea.hbm %s4180_s26, 256  ;;  %s3260_s9 = scalar_lea.hbm %s4317_s3, 512 }
 0x5f8   : > { %p3257_p3 = scmp.ne.s32.totalorder %s4180_s26, %s3256_s7  ;;  %p3261_p2 = scmp.lt.s32.totalorder %s4180_s26, %s4317_s3 }
 0x5f9   : > { %p3262_p5 = scmp.lt.s32.totalorder %s3260_s9, %s3256_s7 }
 0x5fa   : > { %p3258_p4 = pnand %p3257_p3, %p4318_p7 }
 0x5fb   : > { %p3263_p11 = por %p3262_p5, %p3261_p2 }
 0x5fc   : > { %p3259_p0 = pneg %p3258_p4 }
 0x5fe   : > { %p3264_p12 = pnand %p3263_p11, %p3259_p0 }
 0x600   : > { %3267 = shalt.err (!%p3264_p12)
}
 0x601   : > { %s3362_s29 = smov 128  }
 0x602   : > { %2749 = dma.vmem_to_hbm [thread:$0]  (%p4318_p7), %s4175_s2, 256, %s4180_s26, %s2139_s6, %s3362_s29, %s3362_s29, %s3358_s4  }
 0x603 PF: > { %s2167_s30 = sand.u32 1, %s3314_s21   ;;  %p4319_p6 = scmp.ne.s32.totalorder %s4287_s16, 0 }
 0x604   : > { %p4320_p8 = scmp.ge.s32.totalorder %s3326_s24, 2  ;;  %s2168_s25 = scalar_lea.sflag [#allocation4], %s2167_s30 }
 0x606   : > { %p2787_p9 = pnand %p4320_p8, %p4319_p6 }
 0x608   : > { %p2788_p10 = pneg %p2787_p9 }
 0x60a   : > { %3309 = dma.done.wait (%p2788_p10), %s2168_s25, 256  }
 0x60b   : > { %3311 = vsyncadd (%p2788_p10), %s2168_s25, 4294967040  ;;  %p34_p13 = scmp.ge.s32.totalorder %s3582_s0, 4   ;;  %s4321_s21 = smov %s3318_s22 }
 0x60c   : > { %s4322_s22 = smov %s3322_s23  ;;  %s4323_s23 = smov %s3593_s20 }
 0x60d   : > { %s4324_s24 = smov %s3582_s0  ;;  %36 = sbr.rel (!%p34_p13) target bundleno = 22 (0x16), region = 180 }
 0x612   :  { %2173 = vsyncpa [#allocation3], 1 }
 0x613   :  { %2175 = vsyncpa [#allocation3 + $0x1], 1 }
 0x614   :  { %2176 = vsyncpa [#allocation6], 1 }
 0x615   :  { %2177 = vsyncpa [#allocation9], 1 }
 0x616   :  { %2178 = vsyncpa [#allocation12], 1 }
 0x617   :  { %2179 = vsyncpa [#allocation15], 1 }
 0x618   :  { %2180 = vsyncpa [#allocation18], 1 }
 0x619   :  { %2181 = vsyncpa [#allocation4], 1 }
 0x61a   :  { %2183 = vsyncpa [#allocation4 + $0x1], 1 }

</bundles_post_ra>
